<compile_context>
chip_gen: v6e
topology: v6e:2x2x1
jax: 0.10.0
libtpu: 0.0.40
codegen_flags: <defaults>
</compile_context>

<pallas_src>
import jax
import jax.numpy as jnp
from jax.experimental import pallas as pl
from jax.experimental.pallas import tpu as pltpu


# ----------------------------- Pallas kernel ------------------------------ #
def mynet_kernel(patches_ref,   # (4, B_TILE, 288) pool-member-major im2col patches
                 wcd_ref,       # (288, 288)       block-diagonal conv weight
                 bc_ref,        # (1, 288)         conv bias tiled over the 9 positions
                 w1_ref,        # (288, 128)       fc1 weight (rows in p*32+oc order)
                 b1_ref,        # (1, 128)         fc1 bias
                 w2_ref,        # (128, 128)       fc2 weight, zero-padded 10 -> 128 cols
                 b2_ref,        # (1, 128)         fc2 bias, zero-padded
                 out_ref):      # (B_TILE, 128)    lane-dense logits (first 10 valid)
    wcd = wcd_ref[...]

    # Conv (as one big-M matmul per pool member) fused with 2x2 max-pool.
    acc = jnp.dot(patches_ref[0], wcd, preferred_element_type=jnp.float32)
    for m in range(1, 4):
        acc = jnp.maximum(
            acc, jnp.dot(patches_ref[m], wcd, preferred_element_type=jnp.float32))
    # Bias + ReLU hoisted out of the member loop (commutes with the max).
    pooled = jnp.maximum(acc + bc_ref[...], 0.0)            # (B_TILE, 288)

    # fc1: single (B_TILE, 288) @ (288, 128) matmul + bias + ReLU.
    h1 = jnp.maximum(
        jnp.dot(pooled, w1_ref[...], preferred_element_type=jnp.float32)
        + b1_ref[...], 0.0)                                 # (B_TILE, 128)

    # fc2 (output columns padded to 128 for a lane-dense store).
    out_ref[...] = (jnp.dot(h1, w2_ref[...], preferred_element_type=jnp.float32)
                    + b2_ref[...]).astype(out_ref.dtype)    # (B_TILE, 128)


# ------------------------------- JAX glue ---------------------------------- #
def _im2col_member_major(x):
    """x: (B, 3, 6, 6) NCHW -> patches (4, B, 288) with last dim = p*32 + k (k padded 27->32)."""
    B = x.shape[0]
    xp = jnp.pad(x, ((0, 0), (0, 0), (1, 1), (1, 1)))        # (B, 3, 8, 8)
    k = jnp.arange(27)
    ic, kh, kw = k // 9, (k // 3) % 3, k % 3
    m = jnp.arange(4)
    i, j = m // 2, m % 2
    p = jnp.arange(9)
    ph, pw = p // 3, p % 3
    H = 2 * ph[None, :, None] + i[:, None, None] + kh[None, None, :]   # (4, 9, 27)
    W = 2 * pw[None, :, None] + j[:, None, None] + kw[None, None, :]   # (4, 9, 27)
    C = jnp.broadcast_to(ic[None, None, :], (4, 9, 27))
    patches = xp[:, C, H, W]                                 # (B, 4, 9, 27)
    patches = jnp.pad(patches, ((0, 0), (0, 0), (0, 0), (0, 5)))       # (B, 4, 9, 32)
    return jnp.transpose(patches, (1, 0, 2, 3)).reshape(4, B, 9 * 32)  # (4, B, 288)


def _pick_batch_tile(B):
    # M multiples of 256 fill the v6e/v7x MXU; 128 is fine for v5e; small B just
    # rounds up to the sublane granule (8).  512-cap keeps VMEM modest on v7x.
    if B >= 512:
        return 512
    if B >= 256:
        return 256
    if B >= 128:
        return 128
    return max(8, ((B + 7) // 8) * 8)


def mynet_forward(x, wc, bc, w1, b1, w2, b2, compute_dtype=jnp.float32):
    B = x.shape[0]
    B_TILE = _pick_batch_tile(B)
    n_tiles = pl.cdiv(B, B_TILE)
    B_pad = n_tiles * B_TILE

    # --- activations: im2col, batch-pad to a whole number of tiles ---
    patches = _im2col_member_major(x.astype(jnp.float32))               # (4, B, 288)
    patches = jnp.pad(patches, ((0, 0), (0, B_pad - B), (0, 0)))        # (4, B_pad, 288)
    patches = patches.astype(compute_dtype)

    # --- parameter re-layouts (pure glue) ---
    # Conv weight (32,3,3,3)=(oc,ic,kh,kw) -> (27,32) rows = ic*9+kh*3+kw, pad K to 32,
    # then block-diagonal replicate over the 9 pool positions -> (288, 288).
    wct = jnp.pad(wc.reshape(32, 27).T, ((0, 5), (0, 0)))               # (32, 32)
    wcd = jnp.kron(jnp.eye(9, dtype=wct.dtype), wct).astype(compute_dtype)   # (288, 288)
    bc288 = jnp.tile(bc, 9).reshape(1, 288).astype(jnp.float32)

    # fc1: PyTorch flatten order of conv_out is oc*9+p; reorder rows to p*32+oc.
    w1r = w1.reshape(128, 32, 9).transpose(2, 1, 0).reshape(288, 128).astype(compute_dtype)
    b1r = b1.reshape(1, 128).astype(jnp.float32)

    # fc2: pad output columns 10 -> 128 so the kernel's store is lane-dense.
    w2p = jnp.pad(w2.T, ((0, 0), (0, 118))).astype(compute_dtype)       # (128, 128)
    b2p = jnp.pad(b2.reshape(1, 10), ((0, 0), (0, 118))).astype(jnp.float32)

    bpe = jnp.dtype(compute_dtype).itemsize
    cost = pl.CostEstimate(
        flops=int(B_pad) * (2 * 4 * 288 * 288 + 2 * 288 * 128 + 2 * 128 * 128),
        transcendentals=0,
        bytes_accessed=int(patches.size) * bpe
        + (288 * 288 + 288 * 128 + 128 * 128) * bpe
        + (288 + 128 + 128) * 4
        + int(B_pad) * 128 * 4,
    )

    out = pl.pallas_call(
        mynet_kernel,
        out_shape=jax.ShapeDtypeStruct((B_pad, 128), jnp.float32),
        grid=(n_tiles,),
        in_specs=[
            pl.BlockSpec((4, B_TILE, 288), lambda i: (0, i, 0)),
            pl.BlockSpec((288, 288), lambda i: (0, 0)),
            pl.BlockSpec((1, 288), lambda i: (0, 0)),
            pl.BlockSpec((288, 128), lambda i: (0, 0)),
            pl.BlockSpec((1, 128), lambda i: (0, 0)),
            pl.BlockSpec((128, 128), lambda i: (0, 0)),
            pl.BlockSpec((1, 128), lambda i: (0, 0)),
        ],
        out_specs=pl.BlockSpec((B_TILE, 128), lambda i: (i, 0)),
        compiler_params=pltpu.CompilerParams(
            dimension_semantics=("parallel",)),
        cost_estimate=cost,
    )(patches, wcd, bc288, w1r, b1r, w2p, b2p)

    return out[:B, :10]


# ---------------------------- pure-JAX reference ---------------------------- #
def mynet_reference(x, wc, bc, w1, b1, w2, b2):
    conv = jax.lax.conv_general_dilated(
        x, wc, window_strides=(1, 1), padding=((1, 1), (1, 1)),
        dimension_numbers=("NCHW", "OIHW", "NCHW"))
    conv = jax.nn.relu(conv + bc[None, :, None, None])
    pooled = jax.lax.reduce_window(conv, -jnp.inf, jax.lax.max,
                                   (1, 1, 2, 2), (1, 1, 2, 2), "VALID")
    flat = pooled.reshape(x.shape[0], -1)
    h = jax.nn.relu(flat @ w1.T + b1)
    return h @ w2.T + b2


if __name__ == "__main__":
    key = jax.random.PRNGKey(0)
    ks = jax.random.split(key, 7)

    # Deterministic synthetic parameters (shapes from MyNet.__init__).
    wc = jax.random.normal(ks[0], (32, 3, 3, 3), jnp.float32) * 0.1   # Conv2d weight
    bc = jax.random.normal(ks[1], (32,), jnp.float32) * 0.1           # Conv2d bias
    w1 = jax.random.normal(ks[2], (128, 288), jnp.float32) * 0.05     # Linear(288,128)
    b1 = jax.random.normal(ks[3], (128,), jnp.float32) * 0.05
    w2 = jax.random.normal(ks[4], (10, 128), jnp.float32) * 0.05      # Linear(128,10)
    b2 = jax.random.normal(ks[5], (10,), jnp.float32) * 0.05

    # Forward implies 6x6 spatial input: conv(pad=1) keeps 6x6, pool/2 -> 3x3,
    # flatten -> 32*3*3 = 288.  Batch = 2.
    x = jax.random.normal(ks[6], (2, 3, 6, 6), jnp.float32)

    out = mynet_forward(x, wc, bc, w1, b1, w2, b2)
    out = jax.block_until_ready(out)

    ref = mynet_reference(x, wc, bc, w1, b1, w2, b2)
    assert out.shape == (2, 10)
    assert jnp.allclose(out, ref, rtol=5e-4, atol=5e-4), (out, ref)

    print("KERNEL_OK")
</pallas_src>

<mosaic_0001>
module attributes {stable_mosaic.version = 11 : i64} {
  func.func @mynet_kernel(%arg0: i32, %arg1: memref<4x8x288xf32, #tpu.memory_space<vmem>>, %arg2: memref<288x288xf32, #tpu.memory_space<vmem>>, %arg3: memref<1x288xf32, #tpu.memory_space<vmem>>, %arg4: memref<288x128xf32, #tpu.memory_space<vmem>>, %arg5: memref<1x128xf32, #tpu.memory_space<vmem>>, %arg6: memref<128x128xf32, #tpu.memory_space<vmem>>, %arg7: memref<1x128xf32, #tpu.memory_space<vmem>>, %arg8: memref<8x128xf32, #tpu.memory_space<vmem>>) attributes {dimension_semantics = [#tpu.dimension_semantics<parallel>], iteration_bounds = array<i64: 1>, scalar_prefetch = 0 : i64, scratch_operands = 0 : i64, tpu.core_type = #tpu.core_type<tc>, window_params = [{transform_indices = @transform_0, window_bounds = array<i64: 4, 8, 288>}, {pipeline_mode = #tpu.pipeline_mode<synchronous>, transform_indices = @transform_1, window_bounds = array<i64: 288, 288>}, {pipeline_mode = #tpu.pipeline_mode<synchronous>, transform_indices = @transform_2, window_bounds = array<i64: 1, 288>}, {pipeline_mode = #tpu.pipeline_mode<synchronous>, transform_indices = @transform_3, window_bounds = array<i64: 288, 128>}, {pipeline_mode = #tpu.pipeline_mode<synchronous>, transform_indices = @transform_4, window_bounds = array<i64: 1, 128>}, {pipeline_mode = #tpu.pipeline_mode<synchronous>, transform_indices = @transform_5, window_bounds = array<i64: 128, 128>}, {pipeline_mode = #tpu.pipeline_mode<synchronous>, transform_indices = @transform_6, window_bounds = array<i64: 1, 128>}, {transform_indices = @transform_7, window_bounds = array<i64: 8, 128>}]} {
    %c0 = arith.constant 0 : index
    %c0_0 = arith.constant 0 : index
    %0 = vector.load %arg2[%c0, %c0_0] : memref<288x288xf32, #tpu.memory_space<vmem>>, vector<288x288xf32>
    %c0_1 = arith.constant 0 : index
    %c0_2 = arith.constant 0 : index
    %c0_3 = arith.constant 0 : index
    %1 = vector.load %arg1[%c0_1, %c0_2, %c0_3] : memref<4x8x288xf32, #tpu.memory_space<vmem>>, vector<1x8x288xf32>
    %2 = vector.shape_cast %1 : vector<1x8x288xf32> to vector<8x288xf32>
    %cst = arith.constant dense<0.000000e+00> : vector<8x288xf32>
    %3 = tpu.matmul %2, %0, %cst {dimension_numbers = #tpu.dot_dimension_numbers<[1], [0], [0], [1], [0, 0, 1, 1], [], []>} : vector<8x288xf32>, vector<288x288xf32>, vector<8x288xf32> -> vector<8x288xf32>
    %c1 = arith.constant 1 : index
    %c0_4 = arith.constant 0 : index
    %c0_5 = arith.constant 0 : index
    %4 = vector.load %arg1[%c1, %c0_4, %c0_5] : memref<4x8x288xf32, #tpu.memory_space<vmem>>, vector<1x8x288xf32>
    %5 = vector.shape_cast %4 : vector<1x8x288xf32> to vector<8x288xf32>
    %cst_6 = arith.constant dense<0.000000e+00> : vector<8x288xf32>
    %6 = tpu.matmul %5, %0, %cst_6 {dimension_numbers = #tpu.dot_dimension_numbers<[1], [0], [0], [1], [0, 0, 1, 1], [], []>} : vector<8x288xf32>, vector<288x288xf32>, vector<8x288xf32> -> vector<8x288xf32>
    %7 = arith.maximumf %3, %6 : vector<8x288xf32>
    %c2 = arith.constant 2 : index
    %c0_7 = arith.constant 0 : index
    %c0_8 = arith.constant 0 : index
    %8 = vector.load %arg1[%c2, %c0_7, %c0_8] : memref<4x8x288xf32, #tpu.memory_space<vmem>>, vector<1x8x288xf32>
    %9 = vector.shape_cast %8 : vector<1x8x288xf32> to vector<8x288xf32>
    %cst_9 = arith.constant dense<0.000000e+00> : vector<8x288xf32>
    %10 = tpu.matmul %9, %0, %cst_9 {dimension_numbers = #tpu.dot_dimension_numbers<[1], [0], [0], [1], [0, 0, 1, 1], [], []>} : vector<8x288xf32>, vector<288x288xf32>, vector<8x288xf32> -> vector<8x288xf32>
    %11 = arith.maximumf %7, %10 : vector<8x288xf32>
    %c3 = arith.constant 3 : index
    %c0_10 = arith.constant 0 : index
    %c0_11 = arith.constant 0 : index
    %12 = vector.load %arg1[%c3, %c0_10, %c0_11] : memref<4x8x288xf32, #tpu.memory_space<vmem>>, vector<1x8x288xf32>
    %13 = vector.shape_cast %12 : vector<1x8x288xf32> to vector<8x288xf32>
    %cst_12 = arith.constant dense<0.000000e+00> : vector<8x288xf32>
    %14 = tpu.matmul %13, %0, %cst_12 {dimension_numbers = #tpu.dot_dimension_numbers<[1], [0], [0], [1], [0, 0, 1, 1], [], []>} : vector<8x288xf32>, vector<288x288xf32>, vector<8x288xf32> -> vector<8x288xf32>
    %15 = arith.maximumf %11, %14 : vector<8x288xf32>
    %c0_13 = arith.constant 0 : index
    %c0_14 = arith.constant 0 : index
    %16 = vector.load %arg3[%c0_13, %c0_14] : memref<1x288xf32, #tpu.memory_space<vmem>>, vector<1x288xf32>
    %17 = vector.broadcast %16 : vector<1x288xf32> to vector<8x288xf32>
    %18 = arith.addf %15, %17 : vector<8x288xf32>
    %cst_15 = arith.constant 0.000000e+00 : f32
    %19 = vector.broadcast %cst_15 : f32 to vector<8x288xf32>
    %20 = arith.maximumf %18, %19 : vector<8x288xf32>
    %c0_16 = arith.constant 0 : index
    %c0_17 = arith.constant 0 : index
    %21 = vector.load %arg4[%c0_16, %c0_17] : memref<288x128xf32, #tpu.memory_space<vmem>>, vector<288x128xf32>
    %cst_18 = arith.constant dense<0.000000e+00> : vector<8x128xf32>
    %22 = tpu.matmul %20, %21, %cst_18 {dimension_numbers = #tpu.dot_dimension_numbers<[1], [0], [0], [1], [0, 0, 1, 1], [], []>} : vector<8x288xf32>, vector<288x128xf32>, vector<8x128xf32> -> vector<8x128xf32>
    %c0_19 = arith.constant 0 : index
    %c0_20 = arith.constant 0 : index
    %23 = vector.load %arg5[%c0_19, %c0_20] : memref<1x128xf32, #tpu.memory_space<vmem>>, vector<1x128xf32>
    %24 = vector.broadcast %23 : vector<1x128xf32> to vector<8x128xf32>
    %25 = arith.addf %22, %24 : vector<8x128xf32>
    %cst_21 = arith.constant 0.000000e+00 : f32
    %26 = vector.broadcast %cst_21 : f32 to vector<8x128xf32>
    %27 = arith.maximumf %25, %26 : vector<8x128xf32>
    %c0_22 = arith.constant 0 : index
    %c0_23 = arith.constant 0 : index
    %28 = vector.load %arg6[%c0_22, %c0_23] : memref<128x128xf32, #tpu.memory_space<vmem>>, vector<128x128xf32>
    %cst_24 = arith.constant dense<0.000000e+00> : vector<8x128xf32>
    %29 = tpu.matmul %27, %28, %cst_24 {dimension_numbers = #tpu.dot_dimension_numbers<[1], [0], [0], [1], [0, 0, 1, 1], [], []>} : vector<8x128xf32>, vector<128x128xf32>, vector<8x128xf32> -> vector<8x128xf32>
    %c0_25 = arith.constant 0 : index
    %c0_26 = arith.constant 0 : index
    %30 = vector.load %arg7[%c0_25, %c0_26] : memref<1x128xf32, #tpu.memory_space<vmem>>, vector<1x128xf32>
    %31 = vector.broadcast %30 : vector<1x128xf32> to vector<8x128xf32>
    %32 = arith.addf %29, %31 : vector<8x128xf32>
    %c0_27 = arith.constant 0 : index
    %c0_28 = arith.constant 0 : index
    %33 = vector.load %arg8[%c0_27, %c0_28] : memref<8x128xf32, #tpu.memory_space<vmem>>, vector<8x128xf32>
    tpu.vector_store %arg8[%c0_27, %c0_28], %32 {strides = array<i32>} : memref<8x128xf32, #tpu.memory_space<vmem>>, vector<8x128xf32>,
    return
  }
  func.func @transform_0(%arg0: i32) -> (i32, i32, i32) {
    %c0_i32 = arith.constant 0 : i32
    %c0_i32_0 = arith.constant 0 : i32
    %c0_i32_1 = arith.constant 0 : i32
    return %c0_i32, %arg0, %c0_i32_0 : i32, i32, i32
  }
  func.func @transform_1(%arg0: i32) -> (i32, i32) {
    %c0_i32 = arith.constant 0 : i32
    %c0_i32_0 = arith.constant 0 : i32
    %c0_i32_1 = arith.constant 0 : i32
    return %c0_i32, %c0_i32_0 : i32, i32
  }
  func.func @transform_2(%arg0: i32) -> (i32, i32) {
    %c0_i32 = arith.constant 0 : i32
    %c0_i32_0 = arith.constant 0 : i32
    %c0_i32_1 = arith.constant 0 : i32
    return %c0_i32, %c0_i32_0 : i32, i32
  }
  func.func @transform_3(%arg0: i32) -> (i32, i32) {
    %c0_i32 = arith.constant 0 : i32
    %c0_i32_0 = arith.constant 0 : i32
    %c0_i32_1 = arith.constant 0 : i32
    return %c0_i32, %c0_i32_0 : i32, i32
  }
  func.func @transform_4(%arg0: i32) -> (i32, i32) {
    %c0_i32 = arith.constant 0 : i32
    %c0_i32_0 = arith.constant 0 : i32
    %c0_i32_1 = arith.constant 0 : i32
    return %c0_i32, %c0_i32_0 : i32, i32
  }
  func.func @transform_5(%arg0: i32) -> (i32, i32) {
    %c0_i32 = arith.constant 0 : i32
    %c0_i32_0 = arith.constant 0 : i32
    %c0_i32_1 = arith.constant 0 : i32
    return %c0_i32, %c0_i32_0 : i32, i32
  }
  func.func @transform_6(%arg0: i32) -> (i32, i32) {
    %c0_i32 = arith.constant 0 : i32
    %c0_i32_0 = arith.constant 0 : i32
    %c0_i32_1 = arith.constant 0 : i32
    return %c0_i32, %c0_i32_0 : i32, i32
  }
  func.func @transform_7(%arg0: i32) -> (i32, i32) {
    %c0_i32 = arith.constant 0 : i32
    %c0_i32_0 = arith.constant 0 : i32
    return %arg0, %c0_i32 : i32, i32
  }
}

</mosaic_0001>

<bundles_post_ra>
// kernel: tpu_custom_call.1
= control target key start
LH: loop header
LB: loop body
LE: loop exit
PB: predicated region body
PF: predicated region fallthrough
CT: control target
= control target key end

     0   :  { %12 = vsyncpa [#allocation3], 0  ;;  %s2930_s0 = inlined_call_operand.hbm [shape: f32[4,8,288], index: 0, kind: input, shape index: {}]   ;;  %s2931_s1 = inlined_call_operand.hbm [shape: f32[288,288], index: 1, kind: input, shape index: {}]   ;;  %s2932_s2 = inlined_call_operand.vmem [shape: f32[1,288], index: 2, kind: input, shape index: {}]   ;;  %s2933_s3 = inlined_call_operand.hbm [shape: f32[288,128], index: 3, kind: input, shape index: {}]   ;;  %s2934_s4 = inlined_call_operand.vmem [shape: f32[1,128], index: 4, kind: input, shape index: {}]   ;;  %s2935_s5 = inlined_call_operand.hbm [shape: f32[128,128], index: 5, kind: input, shape index: {}]   ;;  %s2936_s6 = inlined_call_operand.vmem [shape: f32[1,128], index: 6, kind: input, shape index: {}]   ;;  %s2937_s7 = inlined_call_operand.hbm [shape: f32[8,128], index: 7, kind: output, shape index: {}]  }
   0x1   :  { %13 = vsyncpa [#allocation6], 0 }
   0x2   :  { %14 = vsyncpa [#allocation9], 0 }
   0x3   :  { %15 = vsyncpa [#allocation4], 0  ;;  %s2113_s24 = smov [#allocation5]   ;;  %s2114_s26 = smov [#allocation2]  }
   0x4   :  { %s33_s25 = sshll.u32 %s2113_s24, 4  ;;  %s21_s27 = sshll.u32 %s2114_s26, 4  ;;  %s34_s25 = int_to_ptr.vmem [resolvable:$true] %s33_s25  ;;  %s22_s27 = int_to_ptr.vmem [resolvable:$true] %s21_s27 }
   0x5   :  { %s2013_s28 = scalar_lea.vmem %s34_s25, 13824  ;;  %p2018_p1 = scmp.lt.s32.totalorder %s34_s25, %s34_s25 }
   0x6   :  { %p2014_p0 = scmp.ne.s32.totalorder %s34_s25, %s2013_s28  ;;  %p2019_p2 = scmp.lt.s32.totalorder %s2013_s28, %s2013_s28 }
   0x8   :  { %p2020_p3 = por %p2019_p2, %p2018_p1 }
   0xa   :  { %p2021_p4 = pnand %p2020_p3, %p2014_p0 }
   0xc   :  { %2024 = shalt.err (!%p2021_p4)
}
   0xd   :  { %s2115_s29 = smov 384   ;;  %s2116_s30 = smov 24  }
   0xe   :  { %39 = dma.hbm_to_vmem [thread:$0]  %s2931_s1, 13824, %s34_s25, [#allocation6], %s2115_s29, %s2115_s29, %s2116_s30  }
   0xf   :  { %s2033_s10 = scalar_lea.vmem %s22_s27, 1536  ;;  %p2038_p6 = scmp.lt.s32.totalorder %s22_s27, %s22_s27 }
  0x10   :  { %p2034_p5 = scmp.ne.s32.totalorder %s22_s27, %s2033_s10  ;;  %p2039_p7 = scmp.lt.s32.totalorder %s2033_s10, %s2033_s10 }
  0x12   :  { %p2040_p8 = por %p2039_p7, %p2038_p6 }
  0x14   :  { %p2041_p9 = pnand %p2040_p8, %p2034_p5 }
  0x16   :  { %2044 = shalt.err (!%p2041_p9)
}
  0x17   :  { %27 = dma.hbm_to_vmem [thread:$0]  %s2930_s0, 1536, %s22_s27, [#allocation3], %s2115_s29, %s2115_s29, %s2116_s30  }
  0x18   :  { %s2117_s13 = smov [#allocation7]  }
  0x19   :  { %s47_s14 = sshll.u32 %s2117_s13, 4  ;;  %s48_s14 = int_to_ptr.vmem [resolvable:$true] %s47_s14 }
  0x1a   :  { %s2053_s15 = scalar_lea.vmem %s48_s14, 4608  ;;  %p2058_p11 = scmp.lt.s32.totalorder %s48_s14, %s48_s14 }
  0x1b   :  { %p2054_p10 = scmp.ne.s32.totalorder %s48_s14, %s2053_s15  ;;  %p2059_p12 = scmp.lt.s32.totalorder %s2053_s15, %s2053_s15 }
  0x1d   :  { %p2060_p13 = por %p2059_p12, %p2058_p11 }
  0x1f   :  { %p2061_p0 = pnand %p2060_p13, %p2054_p10 }
  0x21   :  { %2064 = shalt.err (!%p2061_p0)
}
  0x22   :  { %s2118_s1 = smov 128   ;;  %s2119_s16 = smov 8  }
  0x23   :  { %53 = dma.hbm_to_vmem [thread:$0]  %s2933_s3, 4608, %s48_s14, [#allocation6], %s2118_s1, %s2118_s1, %s2119_s16  }
  0x24   :  { %s2120_s19 = smov [#allocation8]  }
  0x25   :  { %s61_s20 = sshll.u32 %s2120_s19, 4  ;;  %s62_s20 = int_to_ptr.vmem [resolvable:$true] %s61_s20 }
  0x26   :  { %s2073_s0 = scalar_lea.vmem %s62_s20, 2048  ;;  %p2078_p2 = scmp.lt.s32.totalorder %s62_s20, %s62_s20 }
  0x27   :  { %p2074_p1 = scmp.ne.s32.totalorder %s62_s20, %s2073_s0  ;;  %p2079_p3 = scmp.lt.s32.totalorder %s2073_s0, %s2073_s0 }
  0x29   :  { %p2080_p4 = por %p2079_p3, %p2078_p2 }
  0x2b   :  { %p2081_p5 = pnand %p2080_p4, %p2074_p1 }
  0x2d   :  { %2084 = shalt.err (!%p2081_p5)
}
  0x2e   :  { %67 = dma.hbm_to_vmem [thread:$0]  %s2935_s5, 2048, %s62_s20, [#allocation9], %s2118_s1, %s2118_s1, %s2119_s16  }
  0x2f   :  { %2105 = dma.done.wait [#allocation3], 1536  }
  0x30   :  { %2106 = vsyncadd [#allocation3], 4294965760 }
  0x31   :  { %2107 = dma.done.wait [#allocation6], 18432  }
  0x32   :  { %2108 = vsyncadd [#allocation6], 4294948864 }
  0x33   :  { %2109 = dma.done.wait [#allocation9], 2048  }
  0x34   :  { %2110 = vsyncadd [#allocation9], 4294965248  ;;  %v2938_v0 = vmov 0.0   ;;  %v2177_v1 = vld [vmem:[#allocation5 + $0x170] sm:$0xff]  ;;  %v2181_v3 = vld [vmem:[#allocation5 + $0x168] sm:$0xff]  ;;  %vm193_vm0 = vcmask 261120  }
  0x35   :  { %332 = vmatprep.mubr.f32.mxu1 %v2938_v0  ;;  %v2179_v2 = vld [vmem:[#allocation5 + $0x350] sm:$0xff]  ;;  %3115 = vst [vmem:[#allocation16_spill] sm:$0xff] %v2181_v3  ;;  %197 = vmatprep.subr.mxu0 %v2177_v1  ;;  %v2185_v4 = vld [vmem:[#allocation5 + $0x348] sm:$0xff]  ;;  %v2187_v5 = vld [vmem:[#allocation5 + $0x158] sm:$0xff]  ;;  %vm2122_vm1 = vmmov 0   ;;  %s2123_s26 = smov [#allocation10]  }
  0x36   :  { %3114 = vst [vmem:[#allocation15_spill] sm:$0xff] %v2179_v2  ;;  %292 = vmatprep.subr.mxu1 %v2179_v2  ;;  %3116 = vst [vmem:[#allocation17_spill] sm:$0xff] %v2185_v4  ;;  %v2189_v6 = vld [vmem:[#allocation5 + $0x338] sm:$0xff]  ;;  %198 = vmatpush1.msra.mxu0 %v2181_v3  ;;  %v2193_v7 = vld [vmem:[#allocation5 + $0x150] sm:$0xff]  ;;  %s1665_s27 = sshll.u32 %s2123_s26, 4  ;;  %s1666_s27 = int_to_ptr.vmem [resolvable:$true] %s1665_s27 }
  0x37   :  { %3117 = vst [vmem:[#allocation18_spill] sm:$0xff] %v2187_v5  ;;  %293 = vmatpush1.msra.mxu1 %v2185_v4  ;;  %3118 = vst [vmem:[#allocation19_spill] sm:$0xff] %v2193_v7  ;;  %v2195_v8 = vld [vmem:[#allocation5 + $0x330] sm:$0xff]  ;;  %v2197_v9 = vld [vmem:[#allocation5 + $0x140] sm:$0xff]  ;;  %199 = vmatprep.subr.mxu0 %v2187_v5  ;;  %s2085_s28 = scalar_lea.vmem %s1666_s27, 128  ;;  %p2090_p7 = scmp.lt.s32.totalorder %s1666_s27, %s1666_s27 }
  0x38   :  { %3119 = vst [vmem:[#allocation20_spill] sm:$0xff] %v2195_v8  ;;  %3120 = vst [vmem:[#allocation21_spill] sm:$0xff] %v2197_v9  ;;  %294 = vmatprep.subr.mxu1 %v2189_v6  ;;  %v2201_v10 = vld [vmem:[#allocation5 + $0x320] sm:$0xff]  ;;  %v2203_v11 = vld [vmem:[#allocation5 + $0x138] sm:$0xff]  ;;  %200 = vmatpush1.msra.mxu0 %v2193_v7  ;;  %p2086_p6 = scmp.ne.s32.totalorder %s1666_s27, %s2085_s28  ;;  %p2091_p8 = scmp.lt.s32.totalorder %s2085_s28, %s2085_s28 }
  0x39   :  { %3121 = vst [vmem:[#allocation22_spill] sm:$0xff] %v2203_v11  ;;  %v2205_v12 = vld [vmem:[#allocation5 + $0x318] sm:$0xff]  ;;  %295 = vmatpush1.msra.mxu1 %v2195_v8  ;;  %v2209_v13 = vld [vmem:[#allocation5 + $0x128] sm:$0xff]  ;;  %201 = vmatprep.subr.mxu0 %v2197_v9  ;;  %v2215_v15 = vld [vmem:[#allocation5 + $0x120] sm:$0xff] }
  0x3a   :  { %3122 = vst [vmem:[#allocation23_spill] sm:$0xff] %v2209_v13  ;;  %v2211_v14 = vld [vmem:[#allocation5 + $0x308] sm:$0xff]  ;;  %296 = vmatprep.subr.mxu1 %v2201_v10  ;;  %3123 = vst [vmem:[#allocation24_spill] sm:$0xff] %v2215_v15  ;;  %v2217_v16 = vld [vmem:[#allocation5 + $0x300] sm:$0xff]  ;;  %202 = vmatpush1.msra.mxu0 %v2203_v11  ;;  %p2092_p9 = por %p2091_p8, %p2090_p7 }
  0x3b   :  { %297 = vmatpush1.msra.mxu1 %v2205_v12  ;;  %v2221_v17 = vld [vmem:[#allocation5 + $0x110] sm:$0xff]  ;;  %203 = vmatprep.subr.mxu0 %v2209_v13  ;;  %v2227_v19 = vld [vmem:[#allocation5 + $0x2f8] sm:$0xff]  ;;  %v2229_v20 = vld [vmem:[#allocation5 + $0x108] sm:$0xff] }
  0x3c   :  { %3124 = vst [vmem:[#allocation25_spill] sm:$0xff] %v2221_v17  ;;  %v2223_v18 = vld [vmem:[#allocation2 + $0x10] sm:$0xff]  ;;  %298 = vmatprep.subr.mxu1 %v2211_v14  ;;  %204 = vmatpush1.msra.mxu0 %v2215_v15  ;;  %v2233_v21 = vld [vmem:[#allocation5 + $0x178] sm:$0xff]  ;;  %v2240_v23 = vld [vmem:[#allocation5 + $0x2e0] sm:$0xff]  ;;  %p2093_p10 = pnand %p2092_p9, %p2086_p6 }
  0x3d   :  { %299 = vmatpush1.msra.mxu1 %v2217_v16  ;;  %v2235_v22 = vld [vmem:[#allocation5 + $0xf8] sm:$0xff]  ;;  %205 = vmatprep.subr.mxu0 %v2221_v17  ;;  %v2242_v24 = vld [vmem:[#allocation5 + $0xf0] sm:$0xff]  ;;  %v2246_v25 = vld [vmem:[#allocation5 + $0x160] sm:$0xff] }
  0x3e   :  { %1676 = vmatmul.mubr.msk.f32.vlgmr.msra.gmra.mxu1 %vm193_vm0, %v2223_v18  ;;  %1687 = vmatprep.subr.mxu1 %v2227_v19  ;;  %3125 = vst [vmem:[#allocation26_spill] sm:$0xff] %v2246_v25  ;;  %v2248_v26 = vld [vmem:[#allocation5 + $0xe0] sm:$0xff]  ;;  %v2252_v27 = vld [vmem:[#allocation5 + $0x2c8] sm:$0xff]  ;;  %v2254_v28 = vld [vmem:[#allocation5 + $0xd8] sm:$0xff] }
  0x3f   :  { %206 = vmatpush1.msra.mxu0 %v2229_v20  ;;  %1688 = vmatpush3.msra.mxu1 %v2233_v21  ;;  %3126 = vst [vmem:[#allocation27_spill] sm:$0xff] %v2252_v27  ;;  %v2258_v29 = vld [vmem:[#allocation5 + $0x148] sm:$0xff]  ;;  %v2264_v31 = vld [vmem:[#allocation5 + $0x2b0] sm:$0xff]  ;;  %v2266_v32 = vld [vmem:[#allocation5 + $0xc0] sm:$0xff] }
  0x40   :  { %207 = vmatprep.subr.mxu0 %v2235_v22  ;;  %1689 = vmatprep.subr.mxu1 %v2240_v23  ;;  %3127 = vst [vmem:[#allocation28_spill] sm:$0xff] %v2258_v29  ;;  %v2260_v30 = vld [vmem:[#allocation5 + $0xc8] sm:$0xff]  ;;  %3128 = vst [vmem:[#allocation29_spill] sm:$0xff] %v2264_v31  ;;  %v2270_v33 = vld [vmem:[#allocation5 + $0x130] sm:$0xff] }
  0x41   :  { %208 = vmatpush1.msra.mxu0 %v2242_v24  ;;  %1690 = vmatpush3.msra.mxu1 %v2246_v25  ;;  %3129 = vst [vmem:[#allocation30_spill] sm:$0xff] %v2270_v33  ;;  %v2272_v34 = vld [vmem:[#allocation5 + $0xb0] sm:$0xff]  ;;  %v2276_v35 = vld [vmem:[#allocation5 + $0x298] sm:$0xff]  ;;  %v2278_v36 = vld [vmem:[#allocation5 + $0xa8] sm:$0xff] }
  0x42   :  { %209 = vmatprep.subr.mxu0 %v2248_v26  ;;  %1691 = vmatprep.subr.mxu1 %v2252_v27  ;;  %3130 = vst [vmem:[#allocation31_spill] sm:$0xff] %v2276_v35  ;;  %v2282_v37 = vld [vmem:[#allocation5 + $0x118] sm:$0xff]  ;;  %v2288_v39 = vld [vmem:[#allocation5 + $0x280] sm:$0xff]  ;;  %v2290_v40 = vld [vmem:[#allocation5 + $0x90] sm:$0xff] }
  0x43   :  { %210 = vmatpush1.msra.mxu0 %v2254_v28  ;;  %1692 = vmatpush3.msra.mxu1 %v2258_v29  ;;  %3131 = vst [vmem:[#allocation32_spill] sm:$0xff] %v2282_v37  ;;  %v2284_v38 = vld [vmem:[#allocation5 + $0x98] sm:$0xff]  ;;  %3132 = vst [vmem:[#allocation33_spill] sm:$0xff] %v2288_v39  ;;  %v2294_v41 = vld [vmem:[#allocation5 + $0x100] sm:$0xff] }
  0x44   :  { %211 = vmatprep.subr.mxu0 %v2260_v30  ;;  %1693 = vmatprep.subr.mxu1 %v2264_v31  ;;  %3133 = vst [vmem:[#allocation34_spill] sm:$0xff] %v2294_v41  ;;  %v2296_v42 = vld [vmem:[#allocation5 + $0x80] sm:$0xff]  ;;  %v2300_v43 = vld [vmem:[#allocation5 + $0x268] sm:$0xff]  ;;  %v2302_v44 = vld [vmem:[#allocation5 + $0x78] sm:$0xff] }
  0x45   :  { %212 = vmatpush1.msra.mxu0 %v2266_v32  ;;  %1694 = vmatpush3.msra.mxu1 %v2270_v33  ;;  %3134 = vst [vmem:[#allocation35_spill] sm:$0xff] %v2300_v43  ;;  %3135 = vst [vmem:[#allocation36_spill] sm:$0xff] %v2302_v44  ;;  %v2306_v45 = vld [vmem:[#allocation5 + $0xe8] sm:$0xff]  ;;  %v2312_v47 = vld [vmem:[#allocation5 + $0x250] sm:$0xff] }
  0x46   :  { %213 = vmatprep.subr.mxu0 %v2272_v34  ;;  %1695 = vmatprep.subr.mxu1 %v2276_v35  ;;  %3136 = vst [vmem:[#allocation37_spill] sm:$0xff] %v2306_v45  ;;  %v2308_v46 = vld [vmem:[#allocation5 + $0x68] sm:$0xff]  ;;  %3138 = vst [vmem:[#allocation39_spill] sm:$0xff] %v2312_v47  ;;  %v2314_v48 = vld [vmem:[#allocation5 + $0x60] sm:$0xff] }
  0x47   :  { %214 = vmatpush1.msra.mxu0 %v2278_v36  ;;  %1696 = vmatpush3.msra.mxu1 %v2282_v37  ;;  %3137 = vst [vmem:[#allocation38_spill] sm:$0xff] %v2308_v46  ;;  %3139 = vst [vmem:[#allocation40_spill] sm:$0xff] %v2314_v48  ;;  %v2318_v49 = vld [vmem:[#allocation5 + $0xd0] sm:$0xff]  ;;  %v2324_v51 = vld [vmem:[#allocation5 + $0x238] sm:$0xff] }
  0x48   :  { %215 = vmatprep.subr.mxu0 %v2284_v38  ;;  %1697 = vmatprep.subr.mxu1 %v2288_v39  ;;  %3140 = vst [vmem:[#allocation41_spill] sm:$0xff] %v2318_v49  ;;  %v2320_v50 = vld [vmem:[#allocation5 + $0x50] sm:$0xff]  ;;  %3142 = vst [vmem:[#allocation43_spill] sm:$0xff] %v2324_v51  ;;  %v2326_v52 = vld [vmem:[#allocation5 + $0x48] sm:$0xff] }
  0x49   :  { %216 = vmatpush1.msra.mxu0 %v2290_v40  ;;  %1698 = vmatpush3.msra.mxu1 %v2294_v41  ;;  %3141 = vst [vmem:[#allocation42_spill] sm:$0xff] %v2320_v50  ;;  %3143 = vst [vmem:[#allocation44_spill] sm:$0xff] %v2326_v52  ;;  %v2330_v53 = vld [vmem:[#allocation5 + $0xb8] sm:$0xff]  ;;  %v2336_v55 = vld [vmem:[#allocation5 + $0x220] sm:$0xff] }
  0x4a   :  { %217 = vmatprep.subr.mxu0 %v2296_v42  ;;  %1699 = vmatprep.subr.mxu1 %v2300_v43  ;;  %3144 = vst [vmem:[#allocation45_spill] sm:$0xff] %v2330_v53  ;;  %v2332_v54 = vld [vmem:[#allocation5 + $0x38] sm:$0xff]  ;;  %3146 = vst [vmem:[#allocation47_spill] sm:$0xff] %v2336_v55  ;;  %v2338_v56 = vld [vmem:[#allocation5 + $0x30] sm:$0xff] }
  0x4b   :  { %218 = vmatpush1.msra.mxu0 %v2302_v44  ;;  %1700 = vmatpush3.msra.mxu1 %v2306_v45  ;;  %3145 = vst [vmem:[#allocation46_spill] sm:$0xff] %v2332_v54  ;;  %3147 = vst [vmem:[#allocation48_spill] sm:$0xff] %v2338_v56  ;;  %v2342_v57 = vld [vmem:[#allocation5 + $0xa0] sm:$0xff]  ;;  %v2348_v59 = vld [vmem:[#allocation5 + $0x208] sm:$0xff] }
  0x4c   :  { %219 = vmatprep.subr.mxu0 %v2308_v46  ;;  %1701 = vmatprep.subr.mxu1 %v2312_v47  ;;  %3148 = vst [vmem:[#allocation49_spill] sm:$0xff] %v2342_v57  ;;  %v2344_v58 = vld [vmem:[#allocation5 + $0x20] sm:$0xff]  ;;  %3150 = vst [vmem:[#allocation51_spill] sm:$0xff] %v2348_v59  ;;  %v2350_v60 = vld [vmem:[#allocation5 + $0x18] sm:$0xff] }
  0x4d   :  { %220 = vmatpush1.msra.mxu0 %v2314_v48  ;;  %1702 = vmatpush3.msra.mxu1 %v2318_v49  ;;  %3149 = vst [vmem:[#allocation50_spill] sm:$0xff] %v2344_v58  ;;  %3151 = vst [vmem:[#allocation52_spill] sm:$0xff] %v2350_v60  ;;  %v2354_v61 = vld [vmem:[#allocation5 + $0x88] sm:$0xff]  ;;  %v2360_v63 = vld [vmem:[#allocation5 + $0x1f0] sm:$0xff] }
  0x4e   :  { %221 = vmatprep.subr.mxu0 %v2320_v50  ;;  %1703 = vmatprep.subr.mxu1 %v2324_v51  ;;  %3152 = vst [vmem:[#allocation53_spill] sm:$0xff] %v2354_v61  ;;  %v2356_v62 = vld [vmem:[#allocation5 + $0x8] sm:$0xff]  ;;  %3154 = vst [vmem:[#allocation55_spill] sm:$0xff] %v2360_v63  ;;  %v2362_v0 = vld [vmem:[#allocation5] sm:$0xff] }
  0x4f   :  { %222 = vmatpush1.msra.mxu0 %v2326_v52  ;;  %1704 = vmatpush3.msra.mxu1 %v2330_v53  ;;  %3153 = vst [vmem:[#allocation54_spill] sm:$0xff] %v2356_v62  ;;  %3155 = vst [vmem:[#allocation56_spill] sm:$0xff] %v2362_v0  ;;  %v2366_v53 = vld [vmem:[#allocation5 + $0x70] sm:$0xff]  ;;  %v2372_v51 = vld [vmem:[#allocation5 + $0x1d8] sm:$0xff] }
  0x50   :  { %223 = vmatprep.subr.mxu0 %v2332_v54  ;;  %1705 = vmatprep.subr.mxu1 %v2336_v55  ;;  %3156 = vst [vmem:[#allocation57_spill] sm:$0xff] %v2366_v53  ;;  %v2368_v55 = vld [vmem:[#allocation5 + $0x2f0] sm:$0xff]  ;;  %3158 = vst [vmem:[#allocation59_spill] sm:$0xff] %v2372_v51  ;;  %v2378_v49 = vld [vmem:[#allocation5 + $0x58] sm:$0xff] }
  0x51   :  { %224 = vmatpush1.msra.mxu0 %v2338_v56  ;;  %1706 = vmatpush3.msra.mxu1 %v2342_v57  ;;  %3157 = vst [vmem:[#allocation58_spill] sm:$0xff] %v2368_v55  ;;  %v2374_v57 = vld [vmem:[#allocation5 + $0x2e8] sm:$0xff]  ;;  %3160 = vst [vmem:[#allocation61_spill] sm:$0xff] %v2378_v49  ;;  %v2384_v47 = vld [vmem:[#allocation5 + $0x1c0] sm:$0xff] }
  0x52   :  { %225 = vmatprep.subr.mxu0 %v2344_v58  ;;  %1707 = vmatprep.subr.mxu1 %v2348_v59  ;;  %3159 = vst [vmem:[#allocation60_spill] sm:$0xff] %v2374_v57  ;;  %v2380_v59 = vld [vmem:[#allocation5 + $0x2d8] sm:$0xff]  ;;  %3162 = vst [vmem:[#allocation63_spill] sm:$0xff] %v2384_v47  ;;  %v2390_v45 = vld [vmem:[#allocation5 + $0x40] sm:$0xff] }
  0x53   :  { %226 = vmatpush1.msra.mxu0 %v2350_v60  ;;  %1708 = vmatpush3.msra.mxu1 %v2354_v61  ;;  %3161 = vst [vmem:[#allocation62_spill] sm:$0xff] %v2380_v59  ;;  %v2386_v61 = vld [vmem:[#allocation5 + $0x2d0] sm:$0xff]  ;;  %3164 = vst [vmem:[#allocation65_spill] sm:$0xff] %v2390_v45  ;;  %v2396_v43 = vld [vmem:[#allocation5 + $0x1a8] sm:$0xff] }
  0x54   :  { %227 = vmatprep.subr.mxu0 %v2356_v62  ;;  %1709 = vmatprep.subr.mxu1 %v2360_v63  ;;  %3163 = vst [vmem:[#allocation64_spill] sm:$0xff] %v2386_v61  ;;  %v2392_v63 = vld [vmem:[#allocation5 + $0x2c0] sm:$0xff]  ;;  %3166 = vst [vmem:[#allocation67_spill] sm:$0xff] %v2396_v43  ;;  %v2402_v41 = vld [vmem:[#allocation5 + $0x28] sm:$0xff] }
  0x55   :  { %228 = vmatpush1.msra.mxu0 %v2362_v0  ;;  %1710 = vmatpush3.msra.mxu1 %v2366_v53  ;;  %3165 = vst [vmem:[#allocation66_spill] sm:$0xff] %v2392_v63  ;;  %v2398_v53 = vld [vmem:[#allocation5 + $0x2b8] sm:$0xff]  ;;  %3168 = vst [vmem:[#allocation69_spill] sm:$0xff] %v2402_v41  ;;  %v2408_v39 = vld [vmem:[#allocation5 + $0x190] sm:$0xff] }
  0x56   :  { %229 = vmatprep.subr.mxu0 %v2368_v55  ;;  %1711 = vmatprep.subr.mxu1 %v2372_v51  ;;  %3167 = vst [vmem:[#allocation68_spill] sm:$0xff] %v2398_v53  ;;  %v2404_v51 = vld [vmem:[#allocation5 + $0x2a8] sm:$0xff]  ;;  %3170 = vst [vmem:[#allocation71_spill] sm:$0xff] %v2408_v39 }
  0x57   :  { %230 = vmatpush2.msra.mxu0 %v2374_v57  ;;  %1712 = vmatpush3.msra.mxu1 %v2378_v49  ;;  %3169 = vst [vmem:[#allocation70_spill] sm:$0xff] %v2404_v51  ;;  %v2410_v49 = vld [vmem:[#allocation5 + $0x2a0] sm:$0xff]  ;;  %v2452_v37 = vld [vmem:[#allocation5 + $0x248] sm:$0xff] }
  0x58   :  { %231 = vmatprep.subr.mxu0 %v2380_v59  ;;  %1713 = vmatprep.subr.mxu1 %v2384_v47  ;;  %3171 = vst [vmem:[#allocation72_spill] sm:$0xff] %v2410_v49  ;;  %v2414_v59 = vld [vmem:[#allocation5 + $0x10] sm:$0xff]  ;;  %v2416_v47 = vld [vmem:[#allocation2 + $0x8] sm:$0xff]  ;;  %3183 = vst [vmem:[#allocation83_spill] sm:$0xff] %v2452_v37 }
  0x59   :  { %232 = vmatpush2.msra.mxu0 %v2386_v61  ;;  %1714 = vmatpush3.msra.mxu1 %v2390_v45  ;;  %3172 = vst [vmem:[#allocation73_spill] sm:$0xff] %v2414_v59  ;;  %v2420_v61 = vld [vmem:[#allocation5 + $0x290] sm:$0xff]  ;;  %v2422_v45 = vld [vmem:[#allocation2] sm:$0xff] }
  0x5a   :  { %233 = vmatprep.subr.mxu0 %v2392_v63  ;;  %1715 = vmatprep.subr.mxu1 %v2396_v43  ;;  %3173 = vst [vmem:[#allocation74_spill] sm:$0xff] %v2420_v61  ;;  %v2426_v63 = vld [vmem:[#allocation5 + $0x288] sm:$0xff]  ;;  %v2430_v43 = vld [vmem:[#allocation5 + $0x358] sm:$0xff] }
  0x5b   :  { %234 = vmatpush2.msra.mxu0 %v2398_v53  ;;  %1716 = vmatpush3.msra.mxu1 %v2402_v41  ;;  %3174 = vst [vmem:[#allocation75_spill] sm:$0xff] %v2426_v63  ;;  %3175 = vst [vmem:[#allocation76_spill] sm:$0xff] %v2430_v43  ;;  %v2432_v53 = vld [vmem:[#allocation5 + $0x278] sm:$0xff]  ;;  %v2436_v41 = vld [vmem:[#allocation5 + $0x270] sm:$0xff] }
  0x5c   :  { %235 = vmatprep.subr.mxu0 %v2404_v51  ;;  %1717 = vmatprep.subr.mxu1 %v2408_v39  ;;  %3176 = vst [vmem:[#allocation77_spill] sm:$0xff] %v2432_v53  ;;  %3177 = vst [vmem:[#allocation78_spill] sm:$0xff] %v2436_v41  ;;  %v3178_v51 = vmov 0.0   ;;  %v2440_v39 = vld [vmem:[#allocation5 + $0x340] sm:$0xff] }
  0x5d   :  { %236 = vmatpush2.msra.mxu0 %v2410_v49  ;;  %1718 = vmatpush3.msra.mxu1 %v2414_v59  ;;  %3179 = vst [vmem:[#allocation79_spill] sm:$0xff] %v2440_v39  ;;  %v2442_v49 = vld [vmem:[#allocation5 + $0x260] sm:$0xff]  ;;  %v2446_v59 = vld [vmem:[#allocation5 + $0x258] sm:$0xff] }
  0x5e   :  { %403 = vmatprep.mubr.f32.mxu1 %v2416_v47  ;;  %237 = vmatprep.subr.mxu0 %v2420_v61  ;;  %3180 = vst [vmem:[#allocation80_spill] sm:$0xff] %v2442_v49  ;;  %3181 = vst [vmem:[#allocation81_spill] sm:$0xff] %v2446_v59  ;;  %v2450_v61 = vld [vmem:[#allocation5 + $0x328] sm:$0xff] }
  0x5f   :  { %404 = vmatmul.mubr.f32.vlgmr.msra.gmra.mxu1 %v2422_v45  ;;  %1904 = vmatprep.subr.mxu1 %v3178_v51  ;;  %3182 = vst [vmem:[#allocation82_spill] sm:$0xff] %v2450_v61 }
  0x60   :  { %238 = vmatpush2.msra.mxu0 %v2426_v63  ;;  %1905 = vmatpush3.msra.mxu1 %v2430_v43  ;;  %v2456_v63 = vld [vmem:[#allocation5 + $0x240] sm:$0xff]  ;;  %v2460_v43 = vld [vmem:[#allocation5 + $0x310] sm:$0xff] }
  0x61   :  { %239 = vmatprep.subr.mxu0 %v2432_v53  ;;  %1906 = vmatprep.subr.mxu1 %v3178_v51  ;;  %3184 = vst [vmem:[#allocation84_spill] sm:$0xff] %v2456_v63  ;;  %3185 = vst [vmem:[#allocation85_spill] sm:$0xff] %v2460_v43 }
  0x62   :  { %240 = vmatpush2.msra.mxu0 %v2436_v41  ;;  %1907 = vmatpush3.msra.mxu1 %v2440_v39  ;;  %v2464_v41 = vld [vmem:[#allocation5 + $0x230] sm:$0xff]  ;;  %v2468_v39 = vld [vmem:[#allocation5 + $0x228] sm:$0xff] }
  0x63   :  { %241 = vmatprep.subr.mxu0 %v2442_v49  ;;  %1908 = vmatprep.subr.mxu1 %v3178_v51  ;;  %3186 = vst [vmem:[#allocation86_spill] sm:$0xff] %v2464_v41  ;;  %3187 = vst [vmem:[#allocation87_spill] sm:$0xff] %v2468_v39 }
  0x64   :  { %242 = vmatpush2.msra.mxu0 %v2446_v59  ;;  %1909 = vmatpush3.msra.mxu1 %v2450_v61  ;;  %v2473_v59 = vld [vmem:[#allocation5 + $0x218] sm:$0xff]  ;;  %v2478_v61 = vld [vmem:[#allocation5 + $0x210] sm:$0xff] }
  0x65   :  { %243 = vmatprep.subr.mxu0 %v2452_v37  ;;  %1910 = vmatprep.subr.mxu1 %v3178_v51  ;;  %3188 = vst [vmem:[#allocation88_spill] sm:$0xff] %v2473_v59 }
  0x66   :  { %244 = vmatpush2.msra.mxu0 %v2456_v63  ;;  %1911 = vmatpush3.msra.mxu1 %v2460_v43  ;;  %v2482_v63 = vld [vmem:[#allocation5 + $0x200] sm:$0xff]  ;;  %v2486_v43 = vld [vmem:[#allocation5 + $0x1f8] sm:$0xff] }
  0x67   :  { %1912 = vmatprep.mubr.msk.f32.mxu1 %vm2122_vm1, %v3178_v51  ;;  %245 = vmatprep.subr.mxu0 %v2464_v41  ;;  %3189 = vst [vmem:[#allocation89_spill] sm:$0xff] %v2486_v43  ;;  %v2490_v41 = vld [vmem:[#allocation5 + $0x1e8] sm:$0xff] }
  0x68   :  { %1913 = vmatmul.mubr.msk.f32.vlgmr.msra.gmra.mxu1 %vm193_vm0, %v2223_v18  ;;  %486 = vmatprep.subr.mxu1 %v2177_v1  ;;  %v2494_v18 = vld [vmem:[#allocation5 + $0x1e0] sm:$0xff] }
  0x69   :  { %246 = vmatpush2.msra.mxu0 %v2468_v39  ;;  %487 = vmatpush1.msra.mxu1 %v2181_v3  ;;  %3190 = vst [vmem:[#allocation90_spill] sm:$0xff] %v2494_v18  ;;  %v2498_v3 = vld [vmem:[#allocation5 + $0x1d0] sm:$0xff] }
  0x6a   :  { %247 = vmatprep.subr.mxu0 %v2473_v59  ;;  %488 = vmatprep.subr.mxu1 %v2187_v5  ;;  %3191 = vst [vmem:[#allocation91_spill] sm:$0xff] %v2498_v3  ;;  %v2502_v5 = vld [vmem:[#allocation5 + $0x1c8] sm:$0xff] }
  0x6b   :  { %248 = vmatpush2.msra.mxu0 %v2478_v61  ;;  %489 = vmatpush1.msra.mxu1 %v2193_v7  ;;  %v2506_v7 = vld [vmem:[#allocation5 + $0x1b8] sm:$0xff] }
  0x6c   :  { %249 = vmatprep.subr.mxu0 %v2482_v63  ;;  %490 = vmatprep.subr.mxu1 %v2197_v9  ;;  %3192 = vst [vmem:[#allocation92_spill] sm:$0xff] %v2506_v7  ;;  %v2510_v9 = vld [vmem:[#allocation5 + $0x1b0] sm:$0xff] }
  0x6d   :  { %250 = vmatpush2.msra.mxu0 %v2486_v43  ;;  %491 = vmatpush1.msra.mxu1 %v2203_v11  ;;  %v2514_v11 = vld [vmem:[#allocation5 + $0x1a0] sm:$0xff] }
  0x6e   :  { %251 = vmatprep.subr.mxu0 %v2490_v41  ;;  %492 = vmatprep.subr.mxu1 %v2209_v13  ;;  %v2518_v13 = vld [vmem:[#allocation5 + $0x198] sm:$0xff] }
  0x6f   :  { %252 = vmatpush2.msra.mxu0 %v2494_v18  ;;  %493 = vmatpush1.msra.mxu1 %v2215_v15  ;;  %3193 = vst [vmem:[#allocation93_spill] sm:$0xff] %v2518_v13  ;;  %v2522_v15 = vld [vmem:[#allocation5 + $0x188] sm:$0xff] }
  0x70   :  { %253 = vmatprep.subr.mxu0 %v2498_v3  ;;  %494 = vmatprep.subr.mxu1 %v2221_v17  ;;  %3194 = vst [vmem:[#allocation94_spill] sm:$0xff] %v2522_v15  ;;  %v2526_v17 = vld [vmem:[#allocation5 + $0x180] sm:$0xff] }
  0x71   :  { %254 = vmatpush2.msra.mxu0 %v2502_v5  ;;  %495 = vmatpush1.msra.mxu1 %v2229_v20  ;;  %3195 = vst [vmem:[#allocation95_spill] sm:$0xff] %v2526_v17 }
  0x72   :  { %255 = vmatprep.subr.mxu0 %v2506_v7  ;;  %496 = vmatprep.subr.mxu1 %v2235_v22 }
  0x73   :  { %256 = vmatpush2.msra.mxu0 %v2510_v9  ;;  %497 = vmatpush1.msra.mxu1 %v2242_v24 }
  0x74   :  { %257 = vmatprep.subr.mxu0 %v2514_v11  ;;  %498 = vmatprep.subr.mxu1 %v2248_v26 }
  0x75   :  { %258 = vmatpush2.msra.mxu0 %v2518_v13  ;;  %499 = vmatpush1.msra.mxu1 %v2254_v28 }
  0x76   :  { %259 = vmatprep.subr.mxu0 %v2522_v15  ;;  %500 = vmatprep.subr.mxu1 %v2260_v30 }
  0x77   :  { %260 = vmatpush2.msra.mxu0 %v2526_v17  ;;  %261 = vmatprep.mubr.f32.mxu0 %v2416_v47  ;;  %v3196_v47 = vld [vmem:[#allocation32_spill] sm:$0xff] }
  0x78   :  { %501 = vmatpush1.msra.mxu1 %v2266_v32  ;;  %262 = vmatmul.mubr.f32.vlgmr.msra.gmra.mxu0 %v2422_v45  ;;  %v2552_v45 = vld [vmem:[#allocation2 + $0x28] sm:$0xff] }
  0x79   :  { %502 = vmatprep.subr.mxu1 %v2272_v34  ;;  %581 = vmatprep.subr.mxu0 %v2179_v2 }
  0x7a   :  { %503 = vmatpush1.msra.mxu1 %v2278_v36  ;;  %582 = vmatpush1.msra.mxu0 %v2185_v4 }
  0x7b   :  { %504 = vmatprep.subr.mxu1 %v2284_v38  ;;  %583 = vmatprep.subr.mxu0 %v2189_v6 }
  0x7c   :  { %505 = vmatpush1.msra.mxu1 %v2290_v40  ;;  %584 = vmatpush1.msra.mxu0 %v2195_v8 }
  0x7d   :  { %506 = vmatprep.subr.mxu1 %v2296_v42  ;;  %585 = vmatprep.subr.mxu0 %v2201_v10 }
  0x7e   :  { %507 = vmatpush1.msra.mxu1 %v2302_v44  ;;  %586 = vmatpush1.msra.mxu0 %v2205_v12  ;;  %v3211_v44 = vld [vmem:[#allocation75_spill] sm:$0xff] }
  0x7f   :  { %508 = vmatprep.subr.mxu1 %v2308_v46  ;;  %587 = vmatprep.subr.mxu0 %v2211_v14  ;;  %v3209_v46 = vld [vmem:[#allocation74_spill] sm:$0xff] }
  0x80   :  { %509 = vmatpush1.msra.mxu1 %v2314_v48  ;;  %588 = vmatpush1.msra.mxu0 %v2217_v16  ;;  %v3207_v48 = vld [vmem:[#allocation72_spill] sm:$0xff] }
  0x81   :  { %510 = vmatprep.subr.mxu1 %v2320_v50  ;;  %621 = vmatprep.mubr.f32.mxu0 %v3178_v51  ;;  %v3205_v50 = vld [vmem:[#allocation70_spill] sm:$0xff] }
  0x82   :  { %1727 = vmatprep.subr.mxu0 %v2227_v19  ;;  %511 = vmatpush1.msra.mxu1 %v2326_v52  ;;  %v3203_v52 = vld [vmem:[#allocation68_spill] sm:$0xff] }
  0x83   :  { %1678 = vmatmul.mubr.msk.f32.vlgmr.msra.gmra.mxu0 %vm193_vm0, %v2552_v45  ;;  %512 = vmatprep.subr.mxu1 %v2332_v54  ;;  %v3201_v54 = vld [vmem:[#allocation66_spill] sm:$0xff] }
  0x84   :  { %1728 = vmatpush3.msra.mxu0 %v2233_v21  ;;  %513 = vmatpush1.msra.mxu1 %v2338_v56  ;;  %v3199_v56 = vld [vmem:[#allocation64_spill] sm:$0xff] }
  0x85   :  { %1729 = vmatprep.subr.mxu0 %v2240_v23  ;;  %514 = vmatprep.subr.mxu1 %v2344_v58  ;;  %v3197_v58 = vld [vmem:[#allocation62_spill] sm:$0xff] }
  0x86   :  { %1730 = vmatpush3.msra.mxu0 %v2246_v25  ;;  %515 = vmatpush1.msra.mxu1 %v2350_v60  ;;  %v3198_v60 = vld [vmem:[#allocation33_spill] sm:$0xff] }
  0x87   :  { %1731 = vmatprep.subr.mxu0 %v2252_v27  ;;  %516 = vmatprep.subr.mxu1 %v2356_v62  ;;  %v3200_v62 = vld [vmem:[#allocation34_spill] sm:$0xff] }
  0x88   :  { %1732 = vmatpush3.msra.mxu0 %v2258_v29  ;;  %517 = vmatpush1.msra.mxu1 %v2362_v0  ;;  %v3202_v0 = vld [vmem:[#allocation35_spill] sm:$0xff] }
  0x89   :  { %1733 = vmatprep.subr.mxu0 %v2264_v31  ;;  %518 = vmatprep.subr.mxu1 %v2368_v55  ;;  %v3204_v55 = vld [vmem:[#allocation37_spill] sm:$0xff] }
  0x8a   :  { %1734 = vmatpush3.msra.mxu0 %v2270_v33  ;;  %519 = vmatpush2.msra.mxu1 %v2374_v57  ;;  %v3206_v57 = vld [vmem:[#allocation39_spill] sm:$0xff] }
  0x8b   :  { %1735 = vmatprep.subr.mxu0 %v2276_v35  ;;  %520 = vmatprep.subr.mxu1 %v3197_v58  ;;  %v3208_v58 = vld [vmem:[#allocation41_spill] sm:$0xff] }
  0x8c   :  { %1736 = vmatpush3.msra.mxu0 %v3196_v47  ;;  %521 = vmatpush2.msra.mxu1 %v3199_v56  ;;  %v3210_v56 = vld [vmem:[#allocation43_spill] sm:$0xff] }
  0x8d   :  { %1737 = vmatprep.subr.mxu0 %v3198_v60  ;;  %522 = vmatprep.subr.mxu1 %v3201_v54  ;;  %v3212_v54 = vld [vmem:[#allocation45_spill] sm:$0xff] }
  0x8e   :  { %1738 = vmatpush3.msra.mxu0 %v3200_v62  ;;  %523 = vmatpush2.msra.mxu1 %v3203_v52  ;;  %v3213_v52 = vld [vmem:[#allocation47_spill] sm:$0xff] }
  0x8f   :  { %1739 = vmatprep.subr.mxu0 %v3202_v0  ;;  %524 = vmatprep.subr.mxu1 %v3205_v50  ;;  %v3215_v50 = vld [vmem:[#allocation49_spill] sm:$0xff] }
  0x90   :  { %1740 = vmatpush3.msra.mxu0 %v3204_v55  ;;  %525 = vmatpush2.msra.mxu1 %v3207_v48  ;;  %v3214_v55 = vld [vmem:[#allocation78_spill] sm:$0xff]  ;;  %v3216_v48 = vld [vmem:[#allocation51_spill] sm:$0xff] }
  0x91   :  { %1741 = vmatprep.subr.mxu0 %v3206_v57  ;;  %526 = vmatprep.subr.mxu1 %v3209_v46  ;;  %v3218_v46 = vld [vmem:[#allocation53_spill] sm:$0xff] }
  0x92   :  { %1742 = vmatpush3.msra.mxu0 %v3208_v58  ;;  %527 = vmatpush2.msra.mxu1 %v3211_v44  ;;  %v3217_v58 = vld [vmem:[#allocation81_spill] sm:$0xff]  ;;  %v3219_v44 = vld [vmem:[#allocation55_spill] sm:$0xff] }
  0x93   :  { %1743 = vmatprep.subr.mxu0 %v3210_v56  ;;  %528 = vmatprep.subr.mxu1 %v2432_v53  ;;  %v3221_v53 = vld [vmem:[#allocation57_spill] sm:$0xff] }
  0x94   :  { %1744 = vmatpush3.msra.mxu0 %v3212_v54  ;;  %529 = vmatpush2.msra.mxu1 %v3214_v55  ;;  %v3220_v54 = vld [vmem:[#allocation84_spill] sm:$0xff]  ;;  %v3223_v55 = vld [vmem:[#allocation59_spill] sm:$0xff] }
  0x95   :  { %1745 = vmatprep.subr.mxu0 %v3213_v52  ;;  %530 = vmatprep.subr.mxu1 %v2442_v49  ;;  %v3222_v52 = vld [vmem:[#allocation86_spill] sm:$0xff]  ;;  %v3224_v49 = vld [vmem:[#allocation61_spill] sm:$0xff] }
  0x96   :  { %1746 = vmatpush3.msra.mxu0 %v3215_v50  ;;  %531 = vmatpush2.msra.mxu1 %v3217_v58  ;;  %v3225_v58 = vld [vmem:[#allocation63_spill] sm:$0xff] }
  0x97   :  { %1747 = vmatprep.subr.mxu0 %v3216_v48  ;;  %532 = vmatprep.subr.mxu1 %v2452_v37  ;;  %v3226_v37 = vld [vmem:[#allocation65_spill] sm:$0xff] }
  0x98   :  { %1748 = vmatpush3.msra.mxu0 %v3218_v46  ;;  %533 = vmatpush2.msra.mxu1 %v3220_v54  ;;  %v3227_v54 = vld [vmem:[#allocation67_spill] sm:$0xff] }
  0x99   :  { %1749 = vmatprep.subr.mxu0 %v3219_v44  ;;  %534 = vmatprep.subr.mxu1 %v3222_v52  ;;  %v3228_v52 = vld [vmem:[#allocation69_spill] sm:$0xff] }
  0x9a   :  { %1750 = vmatpush3.msra.mxu0 %v3221_v53  ;;  %535 = vmatpush2.msra.mxu1 %v2468_v39  ;;  %v481_v39 = vld [vmem:[#allocation2 + $0x20] sm:$0xff] }
  0x9b   :  { %1751 = vmatprep.subr.mxu0 %v3223_v55  ;;  %536 = vmatprep.subr.mxu1 %v2473_v59  ;;  %v480_v59 = vld [vmem:[#allocation2 + $0x18] sm:$0xff] }
  0x9c   :  { %1752 = vmatpush3.msra.mxu0 %v3224_v49  ;;  %537 = vmatpush2.msra.mxu1 %v2478_v61  ;;  %v3229_v49 = vld [vmem:[#allocation71_spill] sm:$0xff] }
  0x9d   :  { %1753 = vmatprep.subr.mxu0 %v3225_v58  ;;  %538 = vmatprep.subr.mxu1 %v2482_v63  ;;  %v3230_v58 = vld [vmem:[#allocation73_spill] sm:$0xff] }
  0x9e   :  { %1754 = vmatpush3.msra.mxu0 %v3226_v37  ;;  %539 = vmatpush2.msra.mxu1 %v2486_v43  ;;  %v3231_v43 = vld [vmem:[#allocation76_spill] sm:$0xff] }
  0x9f   :  { %1755 = vmatprep.subr.mxu0 %v3227_v54  ;;  %540 = vmatprep.subr.mxu1 %v2490_v41 }
  0xa0   :  { %1756 = vmatpush3.msra.mxu0 %v3228_v52  ;;  %541 = vmatpush2.msra.mxu1 %v2494_v18  ;;  %v3232_v18 = vld [vmem:[#allocation79_spill] sm:$0xff] }
  0xa1   :  { %1757 = vmatprep.subr.mxu0 %v3229_v49  ;;  %542 = vmatprep.subr.mxu1 %v2498_v3  ;;  %v3233_v3 = vld [vmem:[#allocation82_spill] sm:$0xff] }
  0xa2   :  { %1758 = vmatpush3.msra.mxu0 %v3230_v58  ;;  %692 = vmatprep.mubr.f32.mxu0 %v481_v39 }
  0xa3   :  { %1915 = vmatprep.subr.mxu0 %v3178_v51  ;;  %543 = vmatpush2.msra.mxu1 %v2502_v5 }
  0xa4   :  { %693 = vmatmul.mubr.f32.vlgmr.msra.gmra.mxu0 %v480_v59  ;;  %544 = vmatprep.subr.mxu1 %v2506_v7  ;;  %v3234_v7 = vld [vmem:[#allocation85_spill] sm:$0xff] }
  0xa5   :  { %1916 = vmatpush3.msra.mxu0 %v3231_v43  ;;  %545 = vmatpush2.msra.mxu1 %v2510_v9 }
  0xa6   :  { %1917 = vmatprep.subr.mxu0 %v3178_v51  ;;  %546 = vmatprep.subr.mxu1 %v2514_v11 }
  0xa7   :  { %1918 = vmatpush3.msra.mxu0 %v3232_v18  ;;  %547 = vmatpush2.msra.mxu1 %v2518_v13  ;;  %v3235_v13 = vld [vmem:[#allocation16_spill] sm:$0xff] }
  0xa8   :  { %1919 = vmatprep.subr.mxu0 %v3178_v51  ;;  %548 = vmatprep.subr.mxu1 %v2522_v15  ;;  %v3236_v15 = vld [vmem:[#allocation18_spill] sm:$0xff] }
  0xa9   :  { %1920 = vmatpush3.msra.mxu0 %v3233_v3  ;;  %549 = vmatpush2.msra.mxu1 %v2526_v17  ;;  %v2655_v17 = vld [vmem:[#allocation2 + $0x40] sm:$0xff] }
  0xaa   :  { %1921 = vmatprep.subr.mxu0 %v3178_v51  ;;  %550 = vmatprep.mubr.f32.mxu1 %v481_v39  ;;  %v3237_v39 = vld [vmem:[#allocation19_spill] sm:$0xff] }
  0xab   :  { %1922 = vmatpush3.msra.mxu0 %v3234_v7  ;;  %1923 = vmatprep.mubr.msk.f32.mxu0 %vm2122_vm1, %v3178_v51 }
  0xac   :  { %551 = vmatmul.mubr.f32.vlgmr.msra.gmra.mxu1 %v480_v59  ;;  %1924 = vmatmul.mubr.msk.f32.vlgmr.msra.gmra.mxu0 %vm193_vm0, %v2552_v45  ;;  %v3238_v59 = vld [vmem:[#allocation21_spill] sm:$0xff]  ;;  %v3239_v45 = vld [vmem:[#allocation22_spill] sm:$0xff] }
  0xad   :  { %778 = vmatprep.subr.mxu0 %v2177_v1  ;;  %873 = vmatprep.subr.mxu1 %v2179_v2  ;;  %v3240_v2 = vld [vmem:[#allocation23_spill] sm:$0xff] }
  0xae   :  { %779 = vmatpush1.msra.mxu0 %v3235_v13  ;;  %874 = vmatpush1.msra.mxu1 %v2185_v4  ;;  %v3241_v4 = vld [vmem:[#allocation24_spill] sm:$0xff] }
  0xaf   :  { %780 = vmatprep.subr.mxu0 %v3236_v15  ;;  %875 = vmatprep.subr.mxu1 %v2189_v6 }
  0xb0   :  { %781 = vmatpush1.msra.mxu0 %v3237_v39  ;;  %876 = vmatpush1.msra.mxu1 %v2195_v8  ;;  %v3242_v8 = vld [vmem:[#allocation25_spill] sm:$0xff] }
  0xb1   :  { %782 = vmatprep.subr.mxu0 %v3238_v59  ;;  %877 = vmatprep.subr.mxu1 %v2201_v10 }
  0xb2   :  { %783 = vmatpush1.msra.mxu0 %v3239_v45  ;;  %878 = vmatpush1.msra.mxu1 %v2205_v12 }
  0xb3   :  { %784 = vmatprep.subr.mxu0 %v3240_v2  ;;  %879 = vmatprep.subr.mxu1 %v2211_v14 }
  0xb4   :  { %785 = vmatpush1.msra.mxu0 %v3241_v4  ;;  %880 = vmatpush1.msra.mxu1 %v2217_v16 }
  0xb5   :  { %913 = vmatprep.mubr.f32.mxu1 %v3178_v51  ;;  %786 = vmatprep.subr.mxu0 %v3242_v8 }
  0xb6   :  { %1680 = vmatmul.mubr.msk.f32.vlgmr.msra.gmra.mxu1 %vm193_vm0, %v2655_v17  ;;  %1767 = vmatprep.subr.mxu1 %v2227_v19 }
  0xb7   :  { %787 = vmatpush1.msra.mxu0 %v2229_v20  ;;  %1768 = vmatpush3.msra.mxu1 %v2233_v21 }
  0xb8   :  { %788 = vmatprep.subr.mxu0 %v2235_v22  ;;  %1769 = vmatprep.subr.mxu1 %v2240_v23 }
  0xb9   :  { %789 = vmatpush1.msra.mxu0 %v2242_v24  ;;  %1770 = vmatpush3.msra.mxu1 %v2246_v25  ;;  %v3252_v25 = vld [vmem:[#allocation47_spill] sm:$0xff] }
  0xba   :  { %790 = vmatprep.subr.mxu0 %v2248_v26  ;;  %1771 = vmatprep.subr.mxu1 %v2252_v27  ;;  %v3250_v27 = vld [vmem:[#allocation45_spill] sm:$0xff] }
  0xbb   :  { %791 = vmatpush1.msra.mxu0 %v2254_v28  ;;  %1772 = vmatpush3.msra.mxu1 %v2258_v29  ;;  %v3247_v29 = vld [vmem:[#allocation41_spill] sm:$0xff] }
  0xbc   :  { %792 = vmatprep.subr.mxu0 %v2260_v30  ;;  %1773 = vmatprep.subr.mxu1 %v2264_v31  ;;  %v3244_v31 = vld [vmem:[#allocation37_spill] sm:$0xff] }
  0xbd   :  { %793 = vmatpush1.msra.mxu0 %v2266_v32  ;;  %1774 = vmatpush3.msra.mxu1 %v2270_v33  ;;  %v3243_v33 = vld [vmem:[#allocation36_spill] sm:$0xff] }
  0xbe   :  { %794 = vmatprep.subr.mxu0 %v2272_v34  ;;  %1775 = vmatprep.subr.mxu1 %v2276_v35  ;;  %v3245_v35 = vld [vmem:[#allocation38_spill] sm:$0xff] }
  0xbf   :  { %795 = vmatpush1.msra.mxu0 %v2278_v36  ;;  %1776 = vmatpush3.msra.mxu1 %v3196_v47  ;;  %v3246_v47 = vld [vmem:[#allocation40_spill] sm:$0xff] }
  0xc0   :  { %796 = vmatprep.subr.mxu0 %v2284_v38  ;;  %1777 = vmatprep.subr.mxu1 %v3198_v60  ;;  %v3248_v60 = vld [vmem:[#allocation42_spill] sm:$0xff] }
  0xc1   :  { %797 = vmatpush1.msra.mxu0 %v2290_v40  ;;  %1778 = vmatpush3.msra.mxu1 %v3200_v62  ;;  %v3249_v62 = vld [vmem:[#allocation44_spill] sm:$0xff] }
  0xc2   :  { %798 = vmatprep.subr.mxu0 %v2296_v42  ;;  %1779 = vmatprep.subr.mxu1 %v3202_v0  ;;  %v3251_v0 = vld [vmem:[#allocation46_spill] sm:$0xff] }
  0xc3   :  { %799 = vmatpush1.msra.mxu0 %v3243_v33  ;;  %1780 = vmatpush3.msra.mxu1 %v3244_v31  ;;  %v3253_v31 = vld [vmem:[#allocation48_spill] sm:$0xff] }
  0xc4   :  { %800 = vmatprep.subr.mxu0 %v3245_v35  ;;  %1781 = vmatprep.subr.mxu1 %v3206_v57  ;;  %v3254_v57 = vld [vmem:[#allocation50_spill] sm:$0xff] }
  0xc5   :  { %801 = vmatpush1.msra.mxu0 %v3246_v47  ;;  %1782 = vmatpush3.msra.mxu1 %v3247_v29  ;;  %v3255_v29 = vld [vmem:[#allocation52_spill] sm:$0xff] }
  0xc6   :  { %802 = vmatprep.subr.mxu0 %v3248_v60  ;;  %1783 = vmatprep.subr.mxu1 %v3210_v56  ;;  %v3256_v56 = vld [vmem:[#allocation54_spill] sm:$0xff] }
  0xc7   :  { %803 = vmatpush1.msra.mxu0 %v3249_v62  ;;  %1784 = vmatpush3.msra.mxu1 %v3250_v27  ;;  %v3257_v27 = vld [vmem:[#allocation56_spill] sm:$0xff] }
  0xc8   :  { %804 = vmatprep.subr.mxu0 %v3251_v0  ;;  %1785 = vmatprep.subr.mxu1 %v3252_v25  ;;  %v3258_v25 = vld [vmem:[#allocation58_spill] sm:$0xff] }
  0xc9   :  { %805 = vmatpush1.msra.mxu0 %v3253_v31  ;;  %1786 = vmatpush3.msra.mxu1 %v3215_v50  ;;  %v3259_v50 = vld [vmem:[#allocation60_spill] sm:$0xff] }
  0xca   :  { %806 = vmatprep.subr.mxu0 %v3254_v57  ;;  %1787 = vmatprep.subr.mxu1 %v3216_v48  ;;  %v3260_v57 = vld [vmem:[#allocation61_spill] sm:$0xff]  ;;  %v3261_v48 = vld [vmem:[#allocation62_spill] sm:$0xff] }
  0xcb   :  { %807 = vmatpush1.msra.mxu0 %v3255_v29  ;;  %1788 = vmatpush3.msra.mxu1 %v3218_v46  ;;  %v3262_v29 = vld [vmem:[#allocation63_spill] sm:$0xff]  ;;  %v3263_v46 = vld [vmem:[#allocation64_spill] sm:$0xff] }
  0xcc   :  { %808 = vmatprep.subr.mxu0 %v3256_v56  ;;  %1789 = vmatprep.subr.mxu1 %v3219_v44  ;;  %v3264_v44 = vld [vmem:[#allocation66_spill] sm:$0xff] }
  0xcd   :  { %809 = vmatpush1.msra.mxu0 %v3257_v27  ;;  %1790 = vmatpush3.msra.mxu1 %v3221_v53  ;;  %v3265_v53 = vld [vmem:[#allocation68_spill] sm:$0xff] }
  0xce   :  { %810 = vmatprep.subr.mxu0 %v3258_v25  ;;  %1791 = vmatprep.subr.mxu1 %v3223_v55  ;;  %v773_v25 = vld [vmem:[#allocation2 + $0x38] sm:$0xff]  ;;  %v3266_v55 = vld [vmem:[#allocation70_spill] sm:$0xff] }
  0xcf   :  { %811 = vmatpush2.msra.mxu0 %v3259_v50  ;;  %1792 = vmatpush3.msra.mxu1 %v3260_v57  ;;  %v772_v57 = vld [vmem:[#allocation2 + $0x30] sm:$0xff] }
  0xd0   :  { %812 = vmatprep.subr.mxu0 %v3261_v48  ;;  %1793 = vmatprep.subr.mxu1 %v3262_v29  ;;  %v3267_v48 = vld [vmem:[#allocation72_spill] sm:$0xff]  ;;  %v3271_v29 = vld [vmem:[#allocation78_spill] sm:$0xff] }
  0xd1   :  { %813 = vmatpush2.msra.mxu0 %v3263_v46  ;;  %1794 = vmatpush3.msra.mxu1 %v3226_v37  ;;  %v3268_v37 = vld [vmem:[#allocation74_spill] sm:$0xff] }
  0xd2   :  { %814 = vmatprep.subr.mxu0 %v3264_v44  ;;  %1795 = vmatprep.subr.mxu1 %v3227_v54  ;;  %v3269_v54 = vld [vmem:[#allocation75_spill] sm:$0xff] }
  0xd3   :  { %815 = vmatpush2.msra.mxu0 %v3265_v53  ;;  %1796 = vmatpush3.msra.mxu1 %v3228_v52  ;;  %v3270_v52 = vld [vmem:[#allocation77_spill] sm:$0xff] }
  0xd4   :  { %816 = vmatprep.subr.mxu0 %v3266_v55  ;;  %1797 = vmatprep.subr.mxu1 %v3229_v49  ;;  %v3272_v49 = vld [vmem:[#allocation80_spill] sm:$0xff] }
  0xd5   :  { %817 = vmatpush2.msra.mxu0 %v3267_v48  ;;  %1798 = vmatpush3.msra.mxu1 %v3230_v58  ;;  %v3273_v58 = vld [vmem:[#allocation81_spill] sm:$0xff] }
  0xd6   :  { %984 = vmatprep.mubr.f32.mxu1 %v773_v25  ;;  %818 = vmatprep.subr.mxu0 %v3268_v37  ;;  %v3274_v37 = vld [vmem:[#allocation83_spill] sm:$0xff] }
  0xd7   :  { %985 = vmatmul.mubr.f32.vlgmr.msra.gmra.mxu1 %v772_v57  ;;  %1926 = vmatprep.subr.mxu1 %v3178_v51 }
  0xd8   :  { %819 = vmatpush2.msra.mxu0 %v3269_v54  ;;  %1927 = vmatpush3.msra.mxu1 %v3231_v43  ;;  %v3275_v43 = vld [vmem:[#allocation84_spill] sm:$0xff] }
  0xd9   :  { %820 = vmatprep.subr.mxu0 %v3270_v52  ;;  %1928 = vmatprep.subr.mxu1 %v3178_v51 }
  0xda   :  { %821 = vmatpush2.msra.mxu0 %v3271_v29  ;;  %1929 = vmatpush3.msra.mxu1 %v3232_v18  ;;  %v3276_v18 = vld [vmem:[#allocation86_spill] sm:$0xff] }
  0xdb   :  { %822 = vmatprep.subr.mxu0 %v3272_v49  ;;  %1930 = vmatprep.subr.mxu1 %v3178_v51 }
  0xdc   :  { %823 = vmatpush2.msra.mxu0 %v3273_v58  ;;  %1931 = vmatpush3.msra.mxu1 %v3233_v3  ;;  %v3277_v58 = vld [vmem:[#allocation87_spill] sm:$0xff]  ;;  %v3278_v3 = vld [vmem:[#allocation88_spill] sm:$0xff] }
  0xdd   :  { %824 = vmatprep.subr.mxu0 %v3274_v37  ;;  %1932 = vmatprep.subr.mxu1 %v3178_v51 }
  0xde   :  { %825 = vmatpush2.msra.mxu0 %v3275_v43  ;;  %1933 = vmatpush3.msra.mxu1 %v3234_v7  ;;  %v3279_v7 = vld [vmem:[#allocation89_spill] sm:$0xff] }
  0xdf   :  { %1934 = vmatprep.mubr.msk.f32.mxu1 %vm2122_vm1, %v3178_v51  ;;  %826 = vmatprep.subr.mxu0 %v3276_v18 }
  0xe0   :  { %1935 = vmatmul.mubr.msk.f32.vlgmr.msra.gmra.mxu1 %vm193_vm0, %v2655_v17  ;;  %1070 = vmatprep.subr.mxu1 %v2177_v1  ;;  %v3280_v1 = vld [vmem:[#allocation90_spill] sm:$0xff]  ;;  %v3286_v17 = vld [vmem:[#allocation15_spill] sm:$0xff] }
  0xe1   :  { %827 = vmatpush2.msra.mxu0 %v3277_v58  ;;  %1071 = vmatpush1.msra.mxu1 %v3235_v13  ;;  %v3281_v13 = vld [vmem:[#allocation91_spill] sm:$0xff] }
  0xe2   :  { %828 = vmatprep.subr.mxu0 %v3278_v3  ;;  %1072 = vmatprep.subr.mxu1 %v3236_v15  ;;  %v3282_v15 = vld [vmem:[#allocation92_spill] sm:$0xff] }
  0xe3   :  { %829 = vmatpush2.msra.mxu0 %v2478_v61  ;;  %1073 = vmatpush1.msra.mxu1 %v3237_v39 }
  0xe4   :  { %830 = vmatprep.subr.mxu0 %v2482_v63  ;;  %1074 = vmatprep.subr.mxu1 %v3238_v59 }
  0xe5   :  { %831 = vmatpush2.msra.mxu0 %v3279_v7  ;;  %1075 = vmatpush1.msra.mxu1 %v3239_v45 }
  0xe6   :  { %832 = vmatprep.subr.mxu0 %v2490_v41  ;;  %1076 = vmatprep.subr.mxu1 %v3240_v2  ;;  %v3283_v2 = vld [vmem:[#allocation93_spill] sm:$0xff] }
  0xe7   :  { %833 = vmatpush2.msra.mxu0 %v3280_v1  ;;  %1077 = vmatpush1.msra.mxu1 %v3241_v4  ;;  %v3284_v4 = vld [vmem:[#allocation94_spill] sm:$0xff] }
  0xe8   :  { %834 = vmatprep.subr.mxu0 %v3281_v13  ;;  %1078 = vmatprep.subr.mxu1 %v3242_v8  ;;  %v3285_v8 = vld [vmem:[#allocation95_spill] sm:$0xff] }
  0xe9   :  { %835 = vmatpush2.msra.mxu0 %v2502_v5  ;;  %1079 = vmatpush1.msra.mxu1 %v2229_v20  ;;  %v3287_v20 = vld [vmem:[#allocation17_spill] sm:$0xff] }
  0xea   :  { %836 = vmatprep.subr.mxu0 %v3282_v15  ;;  %1080 = vmatprep.subr.mxu1 %v2235_v22  ;;  %v3288_v22 = vld [vmem:[#allocation20_spill] sm:$0xff] }
  0xeb   :  { %837 = vmatpush2.msra.mxu0 %v2510_v9  ;;  %1081 = vmatpush1.msra.mxu1 %v2242_v24  ;;  %v2794_v24 = vld [vmem:[#allocation2 + $0x58] sm:$0xff] }
  0xec   :  { %838 = vmatprep.subr.mxu0 %v2514_v11  ;;  %1082 = vmatprep.subr.mxu1 %v2248_v26  ;;  %v3299_v26 = vld [vmem:[#allocation62_spill] sm:$0xff] }
  0xed   :  { %839 = vmatpush2.msra.mxu0 %v3283_v2  ;;  %1083 = vmatpush1.msra.mxu1 %v2254_v28  ;;  %v3300_v28 = vld [vmem:[#allocation33_spill] sm:$0xff] }
  0xee   :  { %840 = vmatprep.subr.mxu0 %v3284_v4  ;;  %1084 = vmatprep.subr.mxu1 %v2260_v30  ;;  %v3301_v30 = vld [vmem:[#allocation34_spill] sm:$0xff] }
  0xef   :  { %841 = vmatpush2.msra.mxu0 %v3285_v8  ;;  %842 = vmatprep.mubr.f32.mxu0 %v773_v25  ;;  %v3298_v25 = vld [vmem:[#allocation32_spill] sm:$0xff] }
  0xf0   :  { %1085 = vmatpush1.msra.mxu1 %v2266_v32  ;;  %843 = vmatmul.mubr.f32.vlgmr.msra.gmra.mxu0 %v772_v57  ;;  %v3304_v32 = vld [vmem:[#allocation39_spill] sm:$0xff]  ;;  %v3323_v57 = vld [vmem:[#allocation73_spill] sm:$0xff] }
  0xf1   :  { %1086 = vmatprep.subr.mxu1 %v2272_v34  ;;  %1165 = vmatprep.subr.mxu0 %v3286_v17  ;;  %v3306_v34 = vld [vmem:[#allocation74_spill] sm:$0xff] }
  0xf2   :  { %1087 = vmatpush1.msra.mxu1 %v2278_v36  ;;  %1166 = vmatpush1.msra.mxu0 %v3287_v20  ;;  %v3308_v36 = vld [vmem:[#allocation45_spill] sm:$0xff]  ;;  %v1406_v17 = vld [vmem:[#allocation7 + $0xe0] sm:$0xff] }
  0xf3   :  { %1088 = vmatprep.subr.mxu1 %v2284_v38  ;;  %1167 = vmatprep.subr.mxu0 %v2189_v6  ;;  %v3289_v6 = vld [vmem:[#allocation26_spill] sm:$0xff]  ;;  %v3309_v38 = vld [vmem:[#allocation47_spill] sm:$0xff] }
  0xf4   :  { %1089 = vmatpush1.msra.mxu1 %v2290_v40  ;;  %1168 = vmatpush1.msra.mxu0 %v3288_v22  ;;  %v3310_v40 = vld [vmem:[#allocation49_spill] sm:$0xff]  ;;  %v1390_v20 = vld [vmem:[#allocation7 + $0x60] sm:$0xff] }
  0xf5   :  { %1090 = vmatprep.subr.mxu1 %v2296_v42  ;;  %1169 = vmatprep.subr.mxu0 %v2201_v10  ;;  %v3290_v10 = vld [vmem:[#allocation50_spill] sm:$0xff]  ;;  %v3311_v42 = vld [vmem:[#allocation51_spill] sm:$0xff]  ;;  %v1405_v22 = vld [vmem:[#allocation7 + $0xd8] sm:$0xff] }
  0xf6   :  { %1091 = vmatpush1.msra.mxu1 %v3243_v33  ;;  %1170 = vmatpush1.msra.mxu0 %v2205_v12  ;;  %v3291_v12 = vld [vmem:[#allocation27_spill] sm:$0xff]  ;;  %v3305_v33 = vld [vmem:[#allocation41_spill] sm:$0xff] }
  0xf7   :  { %1092 = vmatprep.subr.mxu1 %v3245_v35  ;;  %1171 = vmatprep.subr.mxu0 %v2211_v14  ;;  %v3292_v14 = vld [vmem:[#allocation52_spill] sm:$0xff]  ;;  %v3307_v35 = vld [vmem:[#allocation43_spill] sm:$0xff] }
  0xf8   :  { %1093 = vmatpush1.msra.mxu1 %v3246_v47  ;;  %1172 = vmatpush1.msra.mxu0 %v2217_v16  ;;  %v3293_v16 = vld [vmem:[#allocation28_spill] sm:$0xff] }
  0xf9   :  { %1094 = vmatprep.subr.mxu1 %v3248_v60  ;;  %1205 = vmatprep.mubr.f32.mxu0 %v3178_v51 }
  0xfa   :  { %1807 = vmatprep.subr.mxu0 %v2227_v19  ;;  %1095 = vmatpush1.msra.mxu1 %v3249_v62  ;;  %v3294_v19 = vld [vmem:[#allocation29_spill] sm:$0xff] }
  0xfb   :  { %1682 = vmatmul.mubr.msk.f32.vlgmr.msra.gmra.mxu0 %vm193_vm0, %v2794_v24  ;;  %1096 = vmatprep.subr.mxu1 %v3251_v0  ;;  %v3295_v0 = vld [vmem:[#allocation30_spill] sm:$0xff] }
  0xfc   :  { %1808 = vmatpush3.msra.mxu0 %v2233_v21  ;;  %1097 = vmatpush1.msra.mxu1 %v3253_v31  ;;  %v3296_v21 = vld [vmem:[#allocation58_spill] sm:$0xff]  ;;  %v3303_v31 = vld [vmem:[#allocation37_spill] sm:$0xff] }
  0xfd   :  { %1809 = vmatprep.subr.mxu0 %v2240_v23  ;;  %1098 = vmatprep.subr.mxu1 %v3290_v10  ;;  %v3297_v23 = vld [vmem:[#allocation31_spill] sm:$0xff]  ;;  %v1388_v10 = vld [vmem:[#allocation7 + $0x50] sm:$0xff] }
  0xfe   :  { %1810 = vmatpush3.msra.mxu0 %v3289_v6  ;;  %1099 = vmatpush1.msra.mxu1 %v3292_v14  ;;  %v1404_v6 = vld [vmem:[#allocation7 + $0xd0] sm:$0xff]  ;;  %v1387_v14 = vld [vmem:[#allocation7 + $0x48] sm:$0xff] }
  0xff   :  { %1811 = vmatprep.subr.mxu0 %v3291_v12  ;;  %1100 = vmatprep.subr.mxu1 %v3256_v56  ;;  %v3322_v56 = vld [vmem:[#allocation71_spill] sm:$0xff] }
 0x100   :  { %1812 = vmatpush3.msra.mxu0 %v3293_v16  ;;  %1101 = vmatpush1.msra.mxu1 %v3257_v27  ;;  %v3302_v27 = vld [vmem:[#allocation35_spill] sm:$0xff]  ;;  %v1402_v16 = vld [vmem:[#allocation7 + $0xc0] sm:$0xff] }
 0x101   :  { %1813 = vmatprep.subr.mxu0 %v3294_v19  ;;  %1102 = vmatprep.subr.mxu1 %v3296_v21  ;;  %v1403_v12 = vld [vmem:[#allocation7 + $0xc8] sm:$0xff]  ;;  %v1386_v19 = vld [vmem:[#allocation7 + $0x40] sm:$0xff]  ;;  %v1385_v21 = vld [vmem:[#allocation7 + $0x38] sm:$0xff] }
 0x102   :  { %1814 = vmatpush3.msra.mxu0 %v3295_v0  ;;  %1103 = vmatpush2.msra.mxu1 %v3259_v50  ;;  %v3315_v50 = vld [vmem:[#allocation57_spill] sm:$0xff] }
 0x103   :  { %1815 = vmatprep.subr.mxu0 %v3297_v23  ;;  %1104 = vmatprep.subr.mxu1 %v3299_v26  ;;  %v1401_v0 = vld [vmem:[#allocation7 + $0xb8] sm:$0xff]  ;;  %v1384_v26 = vld [vmem:[#allocation7 + $0x30] sm:$0xff] }
 0x104   :  { %1816 = vmatpush3.msra.mxu0 %v3298_v25  ;;  %1105 = vmatpush2.msra.mxu1 %v3263_v46  ;;  %v3313_v46 = vld [vmem:[#allocation53_spill] sm:$0xff]  ;;  %v1400_v25 = vld [vmem:[#allocation7 + $0xb0] sm:$0xff] }
 0x105   :  { %1817 = vmatprep.subr.mxu0 %v3300_v28  ;;  %1106 = vmatprep.subr.mxu1 %v3264_v44  ;;  %v3312_v44 = vld [vmem:[#allocation81_spill] sm:$0xff] }
 0x106   :  { %1818 = vmatpush3.msra.mxu0 %v3301_v30  ;;  %1107 = vmatpush2.msra.mxu1 %v3265_v53  ;;  %v3321_v53 = vld [vmem:[#allocation69_spill] sm:$0xff] }
 0x107   :  { %1819 = vmatprep.subr.mxu0 %v3302_v27  ;;  %1108 = vmatprep.subr.mxu1 %v3266_v55  ;;  %v334_v55 = vpop.f32.mrf.mxu1  ;;  %v1399_v27 = vld [vmem:[#allocation7 + $0xa8] sm:$0xff] }
 0x108   :  { %1820 = vmatpush3.msra.mxu0 %v3303_v31  ;;  %1109 = vmatpush2.msra.mxu1 %v3267_v48  ;;  %v3314_v48 = vld [vmem:[#allocation55_spill] sm:$0xff] }
 0x109   :  { %1821 = vmatprep.subr.mxu0 %v3304_v32  ;;  %1110 = vmatprep.subr.mxu1 %v3306_v34  ;;  %v1383_v31 = vld [vmem:[#allocation7 + $0x28] sm:$0xff]  ;;  %v1413_v34 = vld [vmem:[#allocation7 + $0x118] sm:$0xff] }
 0x10a   :  { %1822 = vmatpush3.msra.mxu0 %v3305_v33  ;;  %1111 = vmatpush2.msra.mxu1 %v3269_v54  ;;  %v1065_v54 = vld [vmem:[#allocation2 + $0x50] sm:$0xff]  ;;  %v1398_v33 = vld [vmem:[#allocation7 + $0xa0] sm:$0xff] }
 0x10b   :  { %1823 = vmatprep.subr.mxu0 %v3307_v35  ;;  %1112 = vmatprep.subr.mxu1 %v3270_v52  ;;  %v3318_v52 = vld [vmem:[#allocation63_spill] sm:$0xff] }
 0x10c   :  { %1824 = vmatpush3.msra.mxu0 %v3308_v36  ;;  %1113 = vmatpush2.msra.mxu1 %v3271_v29  ;;  %v3316_v29 = vld [vmem:[#allocation59_spill] sm:$0xff]  ;;  %v1382_v36 = vld [vmem:[#allocation7 + $0x20] sm:$0xff] }
 0x10d   :  { %1825 = vmatprep.subr.mxu0 %v3309_v38  ;;  %1114 = vmatprep.subr.mxu1 %v3272_v49  ;;  %v3317_v49 = vld [vmem:[#allocation61_spill] sm:$0xff] }
 0x10e   :  { %1826 = vmatpush3.msra.mxu0 %v3310_v40  ;;  %1115 = vmatpush2.msra.mxu1 %v3312_v44  ;;  %v1397_v38 = vld [vmem:[#allocation7 + $0x98] sm:$0xff]  ;;  %v1412_v40 = vld [vmem:[#allocation7 + $0x110] sm:$0xff] }
 0x10f   :  { %1827 = vmatprep.subr.mxu0 %v3311_v42  ;;  %1116 = vmatprep.subr.mxu1 %v3274_v37  ;;  %v3319_v37 = vld [vmem:[#allocation65_spill] sm:$0xff]  ;;  %v1396_v44 = vld [vmem:[#allocation7 + $0x90] sm:$0xff] }
 0x110   :  { %1828 = vmatpush3.msra.mxu0 %v3313_v46  ;;  %1117 = vmatpush2.msra.mxu1 %v3275_v43  ;;  %v3320_v43 = vld [vmem:[#allocation67_spill] sm:$0xff]  ;;  %v1381_v42 = vld [vmem:[#allocation7 + $0x18] sm:$0xff] }
 0x111   :  { %1829 = vmatprep.subr.mxu0 %v3314_v48  ;;  %1118 = vmatprep.subr.mxu1 %v3276_v18  ;;  %v1411_v46 = vld [vmem:[#allocation7 + $0x108] sm:$0xff]  ;;  %v1380_v48 = vld [vmem:[#allocation7 + $0x10] sm:$0xff] }
 0x112   :  { %1830 = vmatpush3.msra.mxu0 %v3315_v50  ;;  %1119 = vmatpush2.msra.mxu1 %v3277_v58  ;;  %v3324_v58 = vld [vmem:[#allocation76_spill] sm:$0xff] }
 0x113   :  { %1831 = vmatprep.subr.mxu0 %v3316_v29  ;;  %1120 = vmatprep.subr.mxu1 %v3278_v3  ;;  %v1064_v3 = vld [vmem:[#allocation2 + $0x48] sm:$0xff] }
 0x114   :  { %1832 = vmatpush3.msra.mxu0 %v3317_v49  ;;  %1121 = vmatpush2.msra.mxu1 %v2478_v61  ;;  %v1395_v29 = vld [vmem:[#allocation7 + $0x88] sm:$0xff]  ;;  %v1410_v49 = vld [vmem:[#allocation7 + $0x100] sm:$0xff] }
 0x115   :  { %1833 = vmatprep.subr.mxu0 %v3318_v52  ;;  %1122 = vmatprep.subr.mxu1 %v2482_v63  ;;  %v1379_v52 = vld [vmem:[#allocation7 + $0x8] sm:$0xff] }
 0x116   :  { %1834 = vmatpush3.msra.mxu0 %v3319_v37  ;;  %1123 = vmatpush2.msra.mxu1 %v3279_v7  ;;  %v336_v7 = vpop.f32.mrf.mxu1 }
 0x117   :  { %1835 = vmatprep.subr.mxu0 %v3320_v43  ;;  %1124 = vmatprep.subr.mxu1 %v2490_v41  ;;  %v3325_v41 = vld [vmem:[#allocation79_spill] sm:$0xff] }
 0x118   :  { %1836 = vmatpush3.msra.mxu0 %v3321_v53  ;;  %1125 = vmatpush2.msra.mxu1 %v3280_v1  ;;  %v1409_v1 = vld [vmem:[#allocation7 + $0xf8] sm:$0xff] }
 0x119   :  { %1837 = vmatprep.subr.mxu0 %v3322_v56  ;;  %1126 = vmatprep.subr.mxu1 %v3281_v13  ;;  %v1393_v13 = vld [vmem:[#allocation7 + $0x78] sm:$0xff]  ;;  %v1378_v56 = vld [vmem:[#allocation7] sm:$0xff] }
 0x11a   :  { %1838 = vmatpush3.msra.mxu0 %v3323_v57  ;;  %1276 = vmatprep.mubr.f32.mxu0 %v1065_v54 }
 0x11b   :  { %1937 = vmatprep.subr.mxu0 %v3178_v51  ;;  %1127 = vmatpush2.msra.mxu1 %v2502_v5  ;;  %v3326_v5 = vld [vmem:[#allocation82_spill] sm:$0xff] }
 0x11c   :  { %1277 = vmatmul.mubr.f32.vlgmr.msra.gmra.mxu0 %v1064_v3  ;;  %1128 = vmatprep.subr.mxu1 %v3282_v15  ;;  %v1408_v15 = vld [vmem:[#allocation7 + $0xf0] sm:$0xff] }
 0x11d   :  { %1938 = vmatpush3.msra.mxu0 %v3324_v58  ;;  %1129 = vmatpush2.msra.mxu1 %v2510_v9  ;;  %v3327_v9 = vld [vmem:[#allocation85_spill] sm:$0xff] }
 0x11e   :  { %1939 = vmatprep.subr.mxu0 %v3178_v51  ;;  %1130 = vmatprep.subr.mxu1 %v2514_v11 }
 0x11f   :  { %1940 = vmatpush3.msra.mxu0 %v3325_v41  ;;  %v1719_v60 = vpop.f32.mrf.mxu1  ;;  %1131 = vmatpush2.msra.mxu1 %v3283_v2  ;;  %v1392_v2 = vld [vmem:[#allocation7 + $0x70] sm:$0xff] }
 0x120   :  { %1941 = vmatprep.subr.mxu0 %v3178_v51  ;;  %1132 = vmatprep.subr.mxu1 %v3284_v4  ;;  %v1407_v4 = vld [vmem:[#allocation7 + $0xe8] sm:$0xff] }
 0x121   :  { %1942 = vmatpush3.msra.mxu0 %v3326_v5  ;;  %v1720_v61 = vpop.f32.mrf.mxu1  ;;  %1133 = vmatpush2.msra.mxu1 %v3285_v8  ;;  %v1391_v8 = vld [vmem:[#allocation7 + $0x68] sm:$0xff] }
 0x122   :  { %1943 = vmatprep.subr.mxu0 %v3178_v51  ;;  %v1721_v62 = vadd.f32 %v1720_v61, %v1719_v60  ;;  %1134 = vmatprep.mubr.f32.mxu1 %v1065_v54 }
 0x123   :  { %1944 = vmatpush3.msra.mxu0 %v3327_v9  ;;  %1945 = vmatprep.mubr.msk.f32.mxu0 %vm2122_vm1, %v3178_v51 }
 0x124   :  { %1135 = vmatmul.mubr.f32.vlgmr.msra.gmra.mxu1 %v1064_v3  ;;  %1946 = vmatmul.mubr.msk.f32.vlgmr.msra.gmra.mxu0 %vm193_vm0, %v2794_v24  ;;  %v1389_v24 = vld [vmem:[#allocation7 + $0x58] sm:$0xff] }
 0x125   :  { %1948 = vmatprep.subr.mxu1 %v3178_v51  ;;  %1956 = vmatprep.mubr.msk.f32.mxu1 %vm2122_vm1, %v3178_v51 }
 0x126   :  { %1847 = vmatprep.subr.mxu0 %v1409_v1  ;;  %1949 = vmatpush3.msra.mxu1 %v1413_v34 }
 0x127   :  { %1848 = vmatpush3.msra.mxu0 %v1393_v13  ;;  %1950 = vmatprep.subr.mxu1 %v3178_v51 }
 0x128   :  { %v475_v11 = vpop.f32.mrf.mxu1  ;;  %1849 = vmatprep.subr.mxu0 %v1408_v15  ;;  %1951 = vmatpush3.msra.mxu1 %v1412_v40  ;;  %v1580_v40 = vld [vmem:[#allocation8 + $0x78] sm:$0xff] }
 0x129   :  { %v2887_v63 = vadd.f32 %v1721_v62, %v475_v11  ;;  %1850 = vmatpush3.msra.mxu0 %v1392_v2  ;;  %1952 = vmatprep.subr.mxu1 %v3178_v51 }
 0x12a   :  { %v1914_v18 = vpop.f32.mrf.mxu1  ;;  %1851 = vmatprep.subr.mxu0 %v1407_v4  ;;  %1953 = vmatpush3.msra.mxu1 %v1411_v46  ;;  %v1579_v46 = vld [vmem:[#allocation8 + $0x70] sm:$0xff] }
 0x12b   :  { %1852 = vmatpush3.msra.mxu0 %v1391_v8  ;;  %1954 = vmatprep.subr.mxu1 %v3178_v51 }
 0x12c   :  { %1853 = vmatprep.subr.mxu0 %v1406_v17  ;;  %1955 = vmatpush3.msra.mxu1 %v1410_v49  ;;  %v1357_v17 = vlaneseq  ;;  %v1575_v49 = vld [vmem:[#allocation8 + $0x50] sm:$0xff] }
 0x12d   :  { %1854 = vmatpush3.msra.mxu0 %v1390_v20  ;;  %1959 = vmatprep.subr.mxu1 %v3178_v51 }
 0x12e   :  { %1855 = vmatprep.subr.mxu0 %v1405_v22 }
 0x12f   :  { %1856 = vmatpush3.msra.mxu0 %v1389_v24 }
 0x130   :  { %1857 = vmatprep.subr.mxu0 %v1404_v6 }
 0x131   :  { %1858 = vmatpush3.msra.mxu0 %v1388_v10 }
 0x132   :  { %1859 = vmatprep.subr.mxu0 %v1403_v12  ;;  %v1355_v12 = vld [vmem:[%s2932_s2] sm:$0x7] }
 0x133   :  { %1860 = vmatpush3.msra.mxu0 %v1387_v14 }
 0x134   :  { %1861 = vmatprep.subr.mxu0 %v1402_v16 }
 0x135   :  { %1862 = vmatpush3.msra.mxu0 %v1386_v19 }
 0x136   :  { %1863 = vmatprep.subr.mxu0 %v1401_v0 }
 0x137   :  { %1864 = vmatpush3.msra.mxu0 %v1385_v21 }
 0x138   :  { %v263_v47 = vpop.f32.mrf.mxu0  ;;  %1865 = vmatprep.subr.mxu0 %v1400_v25 }
 0x139   :  { %v2889_v39 = vadd.f32 %v334_v55, %v263_v47  ;;  %1866 = vmatpush3.msra.mxu0 %v1384_v26  ;;  %v1394_v55 = vld [vmem:[#allocation7 + $0x80] sm:$0xff] }
 0x13a   :  { %v265_v59 = vpop.f32.mrf.mxu0  ;;  %1867 = vmatprep.subr.mxu0 %v1399_v27 }
 0x13b   :  { %v2891_v45 = vadd.f32 %v336_v7, %v265_v59  ;;  %1868 = vmatpush3.msra.mxu0 %v1383_v31 }
 0x13c   :  { %1869 = vmatprep.subr.mxu0 %v1398_v33 }
 0x13d   :  { %1870 = vmatpush3.msra.mxu0 %v1382_v36 }
 0x13e   :  { %1871 = vmatprep.subr.mxu0 %v1397_v38 }
 0x13f   :  { %1872 = vmatpush3.msra.mxu0 %v1381_v42 }
 0x140   :  { %1873 = vmatprep.subr.mxu0 %v1396_v44 }
 0x141   :  { %1874 = vmatpush3.msra.mxu0 %v1380_v48  ;;  %v1578_v48 = vld [vmem:[#allocation8 + $0x68] sm:$0xff] }
 0x142   :  { %1875 = vmatprep.subr.mxu0 %v1395_v29  ;;  %v1576_v29 = vld [vmem:[#allocation8 + $0x58] sm:$0xff] }
 0x143   :  { %v623_v23 = vpop.f32.mrf.mxu0  ;;  %1876 = vmatpush3.msra.mxu0 %v1379_v52  ;;  %v1574_v52 = vld [vmem:[#allocation8 + $0x48] sm:$0xff] }
 0x144   :  { %1877 = vmatprep.subr.mxu0 %v1394_v55  ;;  %v1569_v55 = vld [vmem:[#allocation8 + $0x20] sm:$0xff] }
 0x145   :  { %v625_v28 = vpop.f32.mrf.mxu0  ;;  %1878 = vmatpush3.msra.mxu0 %v1378_v56  ;;  %v1568_v56 = vld [vmem:[#allocation8 + $0x18] sm:$0xff] }
 0x164   :  { %v1759_v30 = vpop.f32.mrf.mxu0 }
 0x166   :  { %v1760_v32 = vpop.f32.mrf.mxu0 }
 0x167   :  { %v1761_v35 = vadd.f32 %v1760_v32, %v1759_v30 }
 0x16c   :  { %v552_v50 = vpop.f32.mrf.mxu1  ;;  %v764_v43 = vpop.f32.mrf.mxu0 }
 0x16d   :  { %v624_v37 = vadd.f32 %v623_v23, %v552_v50  ;;  %v765_v53 = vadd.f32 %v1761_v35, %v764_v43  ;;  %v1577_v50 = vld [vmem:[#allocation8 + $0x60] sm:$0xff]  ;;  %v1572_v43 = vld [vmem:[#allocation8 + $0x38] sm:$0xff] }
 0x16e   :  { %v554_v54 = vpop.f32.mrf.mxu1  ;;  %v1925_v7 = vpop.f32.mrf.mxu0 }
 0x16f   :  { %v768_v3 = vmax.f32 %v2889_v39, %v624_v37  ;;  %v626_v57 = vadd.f32 %v625_v28, %v554_v54  ;;  %v770_v58 = vmax.f32 %v2887_v63, %v765_v53  ;;  %v1573_v37 = vld [vmem:[#allocation8 + $0x40] sm:$0xff]  ;;  %v1571_v53 = vld [vmem:[#allocation8 + $0x30] sm:$0xff]  ;;  %v1570_v54 = vld [vmem:[#allocation8 + $0x28] sm:$0xff] }
 0x170   :  { %v1565_v7 = vld [vmem:[#allocation8] sm:$0xff] }
 0x171   :  { %v769_v41 = vmax.f32 %v2891_v45, %v626_v57  ;;  %v1358_v45 = vshrl.u32 %v1357_v17, 7  ;;  %v1566_v57 = vld [vmem:[#allocation8 + $0x8] sm:$0xff] }
 0x173   :  { %v1359_v6 = vsub.s32 0, %v1358_v45  ;;  %v1367_v10 = vsub.s32 2, %v1358_v45  ;;  %v1363_v14 = vsub.s32 1, %v1358_v45 }
 0x175   :  { %v1360_v21 = vrot.slane %v1355_v12, %v1359_v6  ;;  %v1368_v25 = vrot.slane %v1355_v12, %v1367_v10  ;;  %v1364_v31 = vrot.slane %v1355_v12, %v1363_v14 }
 0x176   :  { %v915_v60 = vpop.f32.mrf.mxu1 }
 0x178   :  { %v917_v5 = vpop.f32.mrf.mxu1 }
 0x197   :  { %v1799_v61 = vpop.f32.mrf.mxu1 }
 0x199   :  { %v1800_v62 = vpop.f32.mrf.mxu1 }
 0x19a   :  { %v1801_v9 = vadd.f32 %v1800_v62, %v1799_v61 }
 0x1a0   :  { %v1056_v11 = vpop.f32.mrf.mxu1 }
 0x1a1   :  { %v1057_v18 = vadd.f32 %v1801_v9, %v1056_v11 }
 0x1a2   :  { %v1936_v47 = vpop.f32.mrf.mxu1 }
 0x1a3   :  { %v1062_v59 = vmax.f32 %v770_v58, %v1057_v18  ;;  %v1686_v47 = vld [vmem:[%s2936_s6] ss:$0 sm:$0xff] }
 0x1b0   :  { %v844_v1 = vpop.f32.mrf.mxu0 }
 0x1b1   :  { %v916_v13 = vadd.f32 %v915_v60, %v844_v1 }
 0x1b2   :  { %v846_v39 = vpop.f32.mrf.mxu0 }
 0x1b3   :  { %v1060_v15 = vmax.f32 %v768_v3, %v916_v13  ;;  %v918_v2 = vadd.f32 %v917_v5, %v846_v39  ;;  %v1567_v3 = vld [vmem:[#allocation8 + $0x10] sm:$0xff]  ;;  %v1684_v5 = vld [vmem:[%s2934_s4] ss:$0 sm:$0xff] }
 0x1b5   :  { %v1061_v4 = vmax.f32 %v769_v41, %v918_v2 }
 0x1bb   :  { %v1207_v8 = vpop.f32.mrf.mxu0 }
 0x1bd   :  { %v1209_v63 = vpop.f32.mrf.mxu0 }
 0x1dc   :  { %v1839_v20 = vpop.f32.mrf.mxu0 }
 0x1de   :  { %v1840_v22 = vpop.f32.mrf.mxu0 }
 0x1df   :  { %v1841_v24 = vadd.f32 %v1840_v22, %v1839_v20 }
 0x1e4   :  { %v1136_v16 = vpop.f32.mrf.mxu1  ;;  %v1348_v0 = vpop.f32.mrf.mxu0 }
 0x1e5   :  { %v1208_v19 = vadd.f32 %v1207_v8, %v1136_v16  ;;  %v1349_v23 = vadd.f32 %v1841_v24, %v1348_v0 }
 0x1e6   :  { %v1138_v26 = vpop.f32.mrf.mxu1  ;;  %v1947_v27 = vpop.f32.mrf.mxu0 }
 0x1e7   :  { %v1352_v28 = vmax.f32 %v1060_v15, %v1208_v19  ;;  %v1210_v30 = vadd.f32 %v1209_v63, %v1138_v26  ;;  %v1354_v32 = vmax.f32 %v1062_v59, %v1349_v23 }
 0x1e9   :  { %v1353_v33 = vmax.f32 %v1061_v4, %v1210_v30  ;;  %v1372_v34 = vadd.f32 %v1360_v21, %v1352_v28  ;;  %v1374_v35 = vadd.f32 %v1368_v25, %v1354_v32 }
 0x1eb   :  { %v1373_v36 = vadd.f32 %v1364_v31, %v1353_v33  ;;  %v1377_v38 = vmax.f32 %v1374_v35, 0.0  ;;  %v1375_v44 = vmax.f32 %v1372_v34, 0.0 }
 0x1ed   :  { %v1376_v42 = vmax.f32 %v1373_v36, 0.0  ;;  %1957 = vmatmul.mubr.msk.f32.vlgmr.msra.gmra.mxu1 %vm193_vm0, %v1377_v38 }
 0x1ee   :  { %1960 = vmatpush3.msra.mxu1 %v1580_v40  ;;  %1991 = vmatprep.mubr.msk.f32.mxu1 %vm2122_vm1, %v3178_v51 }
 0x1ef   :  { %1488 = vmatprep.mubr.f32.mxu0 %v1376_v42  ;;  %1961 = vmatprep.subr.mxu1 %v3178_v51 }
 0x1f0   :  { %1489 = vmatmul.mubr.f32.vlgmr.msra.gmra.mxu0 %v1375_v44  ;;  %1962 = vmatpush3.msra.mxu1 %v1579_v46 }
 0x1f1   :  { %1963 = vmatprep.subr.mxu1 %v3178_v51 }
 0x1f2   :  { %1964 = vmatpush3.msra.mxu1 %v1578_v48 }
 0x1f3   :  { %1965 = vmatprep.subr.mxu1 %v3178_v51 }
 0x1f4   :  { %1966 = vmatpush3.msra.mxu1 %v1577_v50 }
 0x1f5   :  { %1967 = vmatprep.subr.mxu1 %v3178_v51 }
 0x1f6   :  { %1968 = vmatpush3.msra.mxu1 %v1576_v29 }
 0x1f7   :  { %1969 = vmatprep.subr.mxu1 %v3178_v51 }
 0x1f8   :  { %1970 = vmatpush3.msra.mxu1 %v1575_v49 }
 0x1f9   :  { %1971 = vmatprep.subr.mxu1 %v3178_v51 }
 0x1fa   :  { %1972 = vmatpush3.msra.mxu1 %v1574_v52 }
 0x1fb   :  { %1973 = vmatprep.subr.mxu1 %v3178_v51 }
 0x1fc   :  { %1974 = vmatpush3.msra.mxu1 %v1573_v37 }
 0x1fd   :  { %1975 = vmatprep.subr.mxu1 %v3178_v51 }
 0x1fe   :  { %1976 = vmatpush3.msra.mxu1 %v1572_v43 }
 0x1ff   :  { %1977 = vmatprep.subr.mxu1 %v3178_v51 }
 0x200   :  { %1978 = vmatpush3.msra.mxu1 %v1571_v53 }
 0x201   :  { %1979 = vmatprep.subr.mxu1 %v3178_v51 }
 0x202   :  { %1980 = vmatpush3.msra.mxu1 %v1570_v54 }
 0x203   :  { %1981 = vmatprep.subr.mxu1 %v3178_v51 }
 0x204   :  { %1982 = vmatpush3.msra.mxu1 %v1569_v55 }
 0x205   :  { %1983 = vmatprep.subr.mxu1 %v3178_v51 }
 0x206   :  { %1984 = vmatpush3.msra.mxu1 %v1568_v56 }
 0x207   :  { %1985 = vmatprep.subr.mxu1 %v3178_v51 }
 0x208   :  { %1986 = vmatpush3.msra.mxu1 %v1567_v3 }
 0x209   :  { %1987 = vmatprep.subr.mxu1 %v3178_v51 }
 0x20a   :  { %1988 = vmatpush3.msra.mxu1 %v1566_v57 }
 0x20b   :  { %1989 = vmatprep.subr.mxu1 %v3178_v51 }
 0x20c   :  { %1990 = vmatpush3.msra.mxu1 %v1565_v7 }
 0x2ad   :  { %v1560_v58 = vpop.f32.mrf.mxu1 }
 0x2af   :  { %v1958_v41 = vpop.f32.mrf.mxu1 }
 0x2b0   :  { %v1879_v60 = vpop.f32.mrf.mxu0 }
 0x2b2   :  { %v1880_v61 = vpop.f32.mrf.mxu0 }
 0x2b3   :  { %v1881_v62 = vadd.f32 %v1880_v61, %v1879_v60 }
 0x2b5   :  { %v1491_v9 = vadd.f32 %v1881_v62, %v1684_v5 }
 0x2b7   :  { %v1561_v11 = vadd.f32 %v1560_v58, %v1491_v9 }
 0x2b9   :  { %v1564_v18 = vmax.f32 %v1561_v11, 0.0 }
 0x2bb   :  { %1992 = vmatmul.mubr.f32.vlgmr.msra.gmra.mxu1 %v1564_v18 }
 0x37b   :  { %v1654_v51 = vpop.f32.mrf.mxu1 }
 0x37c   :  { %v1655_v59 = vadd.f32 %v1686_v47, %v1654_v51 }
 0x37d   :  { %v1993_v1 = vpop.f32.mrf.mxu1 }
 0x37e   :  { %1658 = vst [vmem:[#allocation10] sm:$0xff] %v1655_v59 }
 0x37f   :  { %2096 = shalt.err (!%p2093_p10)
}
 0x380   :  { %1668 = dma.vmem_to_hbm [thread:$0]  %s1666_s27, 128, %s2937_s7, [#allocation4]  }
 0x381   :  { %2111 = dma.done.wait [#allocation4], 128  }
 0x382   :  { %2112 = vsyncadd [#allocation4], 4294967168 }
 0x383   :  { %1672 = vsyncpa [#allocation3], 1 }
 0x384   :  { %1673 = vsyncpa [#allocation6], 1 }
 0x385   :  { %1674 = vsyncpa [#allocation9], 1 }
 0x386   :  { %1675 = vsyncpa [#allocation4], 1 }

</bundles_post_ra>
